<compile_context>
chip_gen: v5e
topology: v5e:2x2
jax: 0.10.0
libtpu: 0.0.40
codegen_flags: <defaults>
</compile_context>

<pallas_src>
import jax
import jax.numpy as jnp
from jax.experimental import pallas as pl
from jax.experimental.pallas import tpu as pltpu

NUM_CLASSES = 5


def _dc_kernel(x_ref, w_ref, b_ref, o_ref):
    # x_ref: (TB, H)  activation tile (streamed, double-buffered per grid step)
    # w_ref: (C,  H)  weight, native nn.Linear layout (VMEM-resident)
    # b_ref: (1,  C)  bias (VMEM-resident)
    # o_ref: (TB, C)  log-probabilities
    x = x_ref[...]
    w = w_ref[...]
    b = b_ref[...].astype(jnp.float32)

    # x @ W.T on the MXU: contract the hidden axis of both operands (trans-B),
    # accumulate in f32.
    logits = jax.lax.dot_general(
        x, w,
        dimension_numbers=(((1,), (1,)), ((), ())),
        preferred_element_type=jnp.float32,
    ) + b

    # Numerically stable log_softmax over the class axis.
    m = jnp.max(logits, axis=-1, keepdims=True)
    shifted = logits - m
    lse = jnp.log(jnp.sum(jnp.exp(shifted), axis=-1, keepdims=True))
    o_ref[...] = (shifted - lse).astype(o_ref.dtype)


def diagnostic_classifier_forward(hidden_state, weight, bias, *, block_rows=512):
    """hidden_state: (B, H); weight: (C, H) [PyTorch nn.Linear layout]; bias: (C,)."""
    B, H = hidden_state.shape
    C = weight.shape[0]
    b2d = bias.reshape(1, C)  # keep 2-D for TPU layout friendliness

    # Batch tile: >=512 rows amortizes per-grid-step overhead and reaches
    # ~85% of HBM roofline; small batches use a single full-extent tile
    # (which also satisfies the (8,128) block rule via the full-dim exception).
    tb = B if B <= block_rows else block_rows
    grid = (pl.cdiv(B, tb),)

    cost = pl.CostEstimate(
        flops=2 * B * H * C,
        transcendentals=B * C,  # exp in the softmax
        bytes_accessed=(
            B * H * hidden_state.dtype.itemsize
            + C * H * weight.dtype.itemsize
            + C * bias.dtype.itemsize
            + B * C * 4
        ),
    )

    return pl.pallas_call(
        _dc_kernel,
        out_shape=jax.ShapeDtypeStruct((B, C), jnp.float32),
        grid_spec=pl.GridSpec(
            grid=grid,
            in_specs=[
                # x: one (tb, H) tile per grid step -> double-buffered stream.
                pl.BlockSpec((tb, H), lambda i: (i, 0)),
                # weight / bias: constant block index -> DMA'd once, stay
                # VMEM-resident across all batch tiles.
                pl.BlockSpec((C, H), lambda i: (0, 0)),
                pl.BlockSpec((1, C), lambda i: (0, 0)),
            ],
            out_specs=pl.BlockSpec((tb, C), lambda i: (i, 0)),
        ),
        compiler_params=pltpu.CompilerParams(
            # Independent batch tiles: shard across v7x's 2 TensorCores
            # (harmless on v5e/v6e).
            dimension_semantics=("parallel",),
            # Explicit scoped-VMEM budget: ~1.6 MiB of double-buffered x tiles
            # (even at hidden_dim=400) fits with large headroom on every chip,
            # including v7x's 64 MiB physical VMEM.
            vmem_limit_bytes=32 * 1024 * 1024,
        ),
        cost_estimate=cost,
    )(hidden_state, weight, b2d)


def _reference(hidden_state, weight, bias):
    logits = hidden_state @ weight.T + bias
    return jax.nn.log_softmax(logits, axis=-1)


if __name__ == "__main__":
    key = jax.random.PRNGKey(0)
    k_x, k_w, k_b = jax.random.split(key, 3)

    batch = 1024       # exercises two pipelined 512-row batch tiles
    hidden_dim = 32    # small stand-in for the module's default 400

    # Deterministic synthetic parameters (nn.Linear-like uniform init).
    bound = 1.0 / jnp.sqrt(hidden_dim)
    hidden_state = jax.random.normal(k_x, (batch, hidden_dim), dtype=jnp.float32)
    weight = jax.random.uniform(
        k_w, (NUM_CLASSES, hidden_dim), minval=-bound, maxval=bound, dtype=jnp.float32
    )
    bias = jax.random.uniform(
        k_b, (NUM_CLASSES,), minval=-bound, maxval=bound, dtype=jnp.float32
    )

    out = diagnostic_classifier_forward(hidden_state, weight, bias)
    out = jax.block_until_ready(out)

    ref = _reference(hidden_state, weight, bias)
    assert out.shape == (batch, NUM_CLASSES)
    assert jnp.allclose(out, ref, atol=1e-5, rtol=1e-5), "mismatch vs reference"

    print("KERNEL_OK")
</pallas_src>

<mosaic_0001>
module attributes {stable_mosaic.version = 11 : i64} {
  func.func @_dc_kernel(%arg0: i32, %arg1: memref<512x32xf32, #tpu.memory_space<vmem>>, %arg2: memref<5x32xf32, #tpu.memory_space<vmem>>, %arg3: memref<1x5xf32, #tpu.memory_space<vmem>>, %arg4: memref<512x5xf32, #tpu.memory_space<vmem>>) attributes {dimension_semantics = [#tpu.dimension_semantics<parallel>], iteration_bounds = array<i64: 2>, scalar_prefetch = 0 : i64, scratch_operands = 0 : i64, tpu.core_type = #tpu.core_type<tc>, window_params = [{transform_indices = @transform_0, window_bounds = array<i64: 512, 32>}, {pipeline_mode = #tpu.pipeline_mode<synchronous>, transform_indices = @transform_1, window_bounds = array<i64: 5, 32>}, {pipeline_mode = #tpu.pipeline_mode<synchronous>, transform_indices = @transform_2, window_bounds = array<i64: 1, 5>}, {transform_indices = @transform_3, window_bounds = array<i64: 512, 5>}]} {
    %c0 = arith.constant 0 : index
    %c0_0 = arith.constant 0 : index
    %0 = vector.load %arg1[%c0, %c0_0] : memref<512x32xf32, #tpu.memory_space<vmem>>, vector<512x32xf32>
    %c0_1 = arith.constant 0 : index
    %c0_2 = arith.constant 0 : index
    %1 = vector.load %arg2[%c0_1, %c0_2] : memref<5x32xf32, #tpu.memory_space<vmem>>, vector<5x32xf32>
    %c0_3 = arith.constant 0 : index
    %c0_4 = arith.constant 0 : index
    %2 = vector.load %arg3[%c0_3, %c0_4] : memref<1x5xf32, #tpu.memory_space<vmem>>, vector<1x5xf32>
    %cst = arith.constant dense<0.000000e+00> : vector<512x5xf32>
    %3 = tpu.matmul %0, %1, %cst {dimension_numbers = #tpu.dot_dimension_numbers<[1], [1], [0], [0], [0, 0, 1, 0], [], []>} : vector<512x32xf32>, vector<5x32xf32>, vector<512x5xf32> -> vector<512x5xf32>
    %4 = vector.broadcast %2 : vector<1x5xf32> to vector<512x5xf32>
    %5 = arith.addf %3, %4 : vector<512x5xf32>
    %cst_5 = arith.constant dense<0xFF800000> : vector<512xf32>
    %6 = vector.multi_reduction <maximumf>, %5, %cst_5 [1] : vector<512x5xf32> to vector<512xf32>
    %7 = vector.shape_cast %6 : vector<512xf32> to vector<512x1xf32>
    %8 = vector.broadcast %7 : vector<512x1xf32> to vector<512x5xf32>
    %9 = arith.subf %5, %8 : vector<512x5xf32>
    %10 = math.exp %9 : vector<512x5xf32>
    %cst_6 = arith.constant dense<0.000000e+00> : vector<512xf32>
    %11 = vector.multi_reduction <add>, %10, %cst_6 [1] : vector<512x5xf32> to vector<512xf32>
    %12 = vector.shape_cast %11 : vector<512xf32> to vector<512x1xf32>
    %13 = math.log %12 : vector<512x1xf32>
    %14 = vector.broadcast %13 : vector<512x1xf32> to vector<512x5xf32>
    %15 = arith.subf %9, %14 : vector<512x5xf32>
    %c0_7 = arith.constant 0 : index
    %c0_8 = arith.constant 0 : index
    %16 = vector.load %arg4[%c0_7, %c0_8] : memref<512x5xf32, #tpu.memory_space<vmem>>, vector<512x5xf32>
    tpu.vector_store %arg4[%c0_7, %c0_8], %15 {strides = array<i32>} : memref<512x5xf32, #tpu.memory_space<vmem>>, vector<512x5xf32>,
    return
  }
  func.func @transform_0(%arg0: i32) -> (i32, i32) {
    %c0_i32 = arith.constant 0 : i32
    %c0_i32_0 = arith.constant 0 : i32
    return %arg0, %c0_i32 : i32, i32
  }
  func.func @transform_1(%arg0: i32) -> (i32, i32) {
    %c0_i32 = arith.constant 0 : i32
    %c0_i32_0 = arith.constant 0 : i32
    %c0_i32_1 = arith.constant 0 : i32
    return %c0_i32, %c0_i32_0 : i32, i32
  }
  func.func @transform_2(%arg0: i32) -> (i32, i32) {
    %c0_i32 = arith.constant 0 : i32
    %c0_i32_0 = arith.constant 0 : i32
    %c0_i32_1 = arith.constant 0 : i32
    return %c0_i32, %c0_i32_0 : i32, i32
  }
  func.func @transform_3(%arg0: i32) -> (i32, i32) {
    %c0_i32 = arith.constant 0 : i32
    %c0_i32_0 = arith.constant 0 : i32
    return %arg0, %c0_i32 : i32, i32
  }
}

</mosaic_0001>

<bundles_post_ra>
// kernel: tpu_custom_call.1
= control target key start
LH: loop header
LB: loop body
LE: loop exit
PB: predicated region body
PF: predicated region fallthrough
CT: control target
= control target key end

     0   :  { %s1909_s12 = smov 0   ;;  %s3101_s0 = inlined_call_operand.vmem [shape: f32[1024,32], index: 0, kind: input, shape index: {}]   ;;  %s3102_s1 = inlined_call_operand.vmem [shape: f32[5,32], index: 1, kind: input, shape index: {}]   ;;  %s3103_s2 = inlined_call_operand.vmem [shape: f32[1,5], index: 2, kind: input, shape index: {}]   ;;  %s3104_s3 = inlined_call_operand.vmem [shape: f32[1024,5], index: 3, kind: output, shape index: {}]  }
   0x1 LB: > { %s1537_s13 = sadd.s32 4294967295, %s1887_s12   ;;  %p1541_p0 = scmp.ge.s32.totalorder %s1887_s12, 1  ;;  %s1887_s12 = sphi %s1909_s12, %s13_s12  }
   0x2   : > { %p138_p1 = scmp.lt.s32.totalorder %s1887_s12, 3 }
   0x4   : > { %p139_p2 = pnand %p1541_p0, %p138_p1 }
   0x6   : > { %142 = sbr.rel (%p139_p2) target bundleno = 620 (0x26c), region = 32 }
   0xb   : > { %v238_v0 = vld [vmem:[%s3102_s1] sm:$0x1f]  ;;  %vm243_vm0 = vcmask 261120   ;;  %s1542_s16 = sshll.u32 %s1537_s13, 6  ;;  %vm648_vm1 = vcmask 39936  }
   0xc   : > { %1546 = vmatpush.xpose.msk.msra.mxu0 %vm243_vm0, %v238_v0  ;;  %1613 = vmatpush.xpose.msk.msra.mxu1 %vm243_vm0, %v238_v0  ;;  %p163_p3 = scmp.lt.s32.totalorder %s1542_s16, 127  ;;  %v2056_v61 = vld [vmem:[%s3103_s2] ss:$0 sm:$0xff] }
   0xd   : > { %1614 = vmatpush.xpose.msk.msra.mxu2 %vm243_vm0, %v238_v0  ;;  %1615 = vmatpush.xpose.msk.msra.mxu3 %vm243_vm0, %v238_v0 }
   0xe   : > { %s3241_s16 = smov (!%p163_p3, %s1542_s16), 127 }
   0xf   : > { %s1543_s17 = sshll.u32 %s3241_s16, 3 }
  0x10   : > { %s1932_s20 = scalar_lea.vmem %s3101_s0, %s1543_s17  ;;  %s2850_s25 = scalar_lea.vmem %s3104_s3, %s1543_s17 }
  0x11   : > { %v174_v1 = vld [vmem:[%s1932_s20] sm:$0xff]  ;;  %v175_v5 = vld [vmem:[%s1932_s20 + $0x8] sm:$0xff]  ;;  %v176_v9 = vld [vmem:[%s1932_s20 + $0x10] sm:$0xff] }
  0x12   : > { %v190_v2 = vld [vmem:[%s1932_s20 + $0x80] sm:$0xff]  ;;  %1547 = vmatmul.msk.f32.vlgmr.msra.gmra.mxu0 %vm243_vm0, %v174_v1  ;;  %v191_v6 = vld [vmem:[%s1932_s20 + $0x88] sm:$0xff]  ;;  %v192_v10 = vld [vmem:[%s1932_s20 + $0x90] sm:$0xff] }
  0x13   : > { %v206_v3 = vld [vmem:[%s1932_s20 + $0x100] sm:$0xff]  ;;  %1563 = vmatmul.msk.f32.vlgmr.msra.gmra.mxu1 %vm243_vm0, %v190_v2  ;;  %v207_v7 = vld [vmem:[%s1932_s20 + $0x108] sm:$0xff]  ;;  %v208_v11 = vld [vmem:[%s1932_s20 + $0x110] sm:$0xff] }
  0x14   : > { %v222_v4 = vld [vmem:[%s1932_s20 + $0x180] sm:$0xff]  ;;  %1579 = vmatmul.msk.f32.vlgmr.msra.gmra.mxu2 %vm243_vm0, %v206_v3  ;;  %v223_v8 = vld [vmem:[%s1932_s20 + $0x188] sm:$0xff]  ;;  %v224_v12 = vld [vmem:[%s1932_s20 + $0x190] sm:$0xff] }
  0x15   : > { %1595 = vmatmul.msk.f32.vlgmr.msra.gmra.mxu3 %vm243_vm0, %v222_v4  ;;  %v177_v13 = vld [vmem:[%s1932_s20 + $0x18] sm:$0xff]  ;;  %v178_v17 = vld [vmem:[%s1932_s20 + $0x20] sm:$0xff]  ;;  %v179_v21 = vld [vmem:[%s1932_s20 + $0x28] sm:$0xff] }
  0x16   : > { %v193_v14 = vld [vmem:[%s1932_s20 + $0x98] sm:$0xff]  ;;  %v194_v18 = vld [vmem:[%s1932_s20 + $0xa0] sm:$0xff]  ;;  %v195_v22 = vld [vmem:[%s1932_s20 + $0xa8] sm:$0xff] }
  0x17   : > { %v209_v15 = vld [vmem:[%s1932_s20 + $0x118] sm:$0xff]  ;;  %v210_v19 = vld [vmem:[%s1932_s20 + $0x120] sm:$0xff]  ;;  %v211_v23 = vld [vmem:[%s1932_s20 + $0x128] sm:$0xff] }
  0x18   : > { %v225_v16 = vld [vmem:[%s1932_s20 + $0x198] sm:$0xff]  ;;  %v226_v20 = vld [vmem:[%s1932_s20 + $0x1a0] sm:$0xff]  ;;  %v227_v24 = vld [vmem:[%s1932_s20 + $0x1a8] sm:$0xff] }
  0x19   : > { %v180_v25 = vld [vmem:[%s1932_s20 + $0x30] sm:$0xff]  ;;  %v181_v29 = vld [vmem:[%s1932_s20 + $0x38] sm:$0xff]  ;;  %v182_v33 = vld [vmem:[%s1932_s20 + $0x40] sm:$0xff] }
  0x1a   : > { %1548 = vmatmul.msk.f32.gmra.mxu0 %vm243_vm0, %v175_v5  ;;  %v196_v26 = vld [vmem:[%s1932_s20 + $0xb0] sm:$0xff]  ;;  %v197_v30 = vld [vmem:[%s1932_s20 + $0xb8] sm:$0xff]  ;;  %v198_v34 = vld [vmem:[%s1932_s20 + $0xc0] sm:$0xff] }
  0x1b   : > { %1564 = vmatmul.msk.f32.gmra.mxu1 %vm243_vm0, %v191_v6  ;;  %v212_v27 = vld [vmem:[%s1932_s20 + $0x130] sm:$0xff]  ;;  %v213_v31 = vld [vmem:[%s1932_s20 + $0x138] sm:$0xff]  ;;  %v214_v35 = vld [vmem:[%s1932_s20 + $0x140] sm:$0xff] }
  0x1c   : > { %1580 = vmatmul.msk.f32.gmra.mxu2 %vm243_vm0, %v207_v7  ;;  %v228_v28 = vld [vmem:[%s1932_s20 + $0x1b0] sm:$0xff]  ;;  %v229_v32 = vld [vmem:[%s1932_s20 + $0x1b8] sm:$0xff]  ;;  %v230_v36 = vld [vmem:[%s1932_s20 + $0x1c0] sm:$0xff] }
  0x1d   : > { %1596 = vmatmul.msk.f32.gmra.mxu3 %vm243_vm0, %v223_v8  ;;  %v183_v37 = vld [vmem:[%s1932_s20 + $0x48] sm:$0xff]  ;;  %v184_v41 = vld [vmem:[%s1932_s20 + $0x50] sm:$0xff]  ;;  %v185_v45 = vld [vmem:[%s1932_s20 + $0x58] sm:$0xff] }
  0x1e   : > { %v199_v38 = vld [vmem:[%s1932_s20 + $0xc8] sm:$0xff]  ;;  %v200_v42 = vld [vmem:[%s1932_s20 + $0xd0] sm:$0xff]  ;;  %v201_v46 = vld [vmem:[%s1932_s20 + $0xd8] sm:$0xff] }
  0x1f   : > { %v215_v39 = vld [vmem:[%s1932_s20 + $0x148] sm:$0xff]  ;;  %v216_v43 = vld [vmem:[%s1932_s20 + $0x150] sm:$0xff]  ;;  %v217_v47 = vld [vmem:[%s1932_s20 + $0x158] sm:$0xff] }
  0x20   : > { %v231_v40 = vld [vmem:[%s1932_s20 + $0x1c8] sm:$0xff]  ;;  %v232_v44 = vld [vmem:[%s1932_s20 + $0x1d0] sm:$0xff]  ;;  %v233_v48 = vld [vmem:[%s1932_s20 + $0x1d8] sm:$0xff] }
  0x21   : > { %v186_v49 = vld [vmem:[%s1932_s20 + $0x60] sm:$0xff]  ;;  %v219_v53 = vld [vmem:[%s1932_s20 + $0x168] sm:$0xff]  ;;  %v188_v57 = vld [vmem:[%s1932_s20 + $0x70] sm:$0xff] }
  0x22   : > { %1549 = vmatmul.msk.f32.gmra.mxu0 %vm243_vm0, %v176_v9  ;;  %v218_v50 = vld [vmem:[%s1932_s20 + $0x160] sm:$0xff]  ;;  %v187_v54 = vld [vmem:[%s1932_s20 + $0x68] sm:$0xff]  ;;  %v204_v58 = vld [vmem:[%s1932_s20 + $0xf0] sm:$0xff] }
  0x23   : > { %1565 = vmatmul.msk.f32.gmra.mxu1 %vm243_vm0, %v192_v10  ;;  %v234_v51 = vld [vmem:[%s1932_s20 + $0x1e0] sm:$0xff]  ;;  %v203_v55 = vld [vmem:[%s1932_s20 + $0xe8] sm:$0xff]  ;;  %v220_v59 = vld [vmem:[%s1932_s20 + $0x170] sm:$0xff] }
  0x24   : > { %1581 = vmatmul.msk.f32.gmra.mxu2 %vm243_vm0, %v208_v11  ;;  %v202_v52 = vld [vmem:[%s1932_s20 + $0xe0] sm:$0xff]  ;;  %v235_v56 = vld [vmem:[%s1932_s20 + $0x1e8] sm:$0xff]  ;;  %v236_v60 = vld [vmem:[%s1932_s20 + $0x1f0] sm:$0xff] }
  0x25   : > { %1597 = vmatmul.msk.f32.gmra.mxu3 %vm243_vm0, %v224_v12  ;;  %v189_v4 = vld [vmem:[%s1932_s20 + $0x78] sm:$0xff] }
  0x26   : > { %v221_v5 = vld [vmem:[%s1932_s20 + $0x178] sm:$0xff] }
  0x27   : > { %v237_v6 = vld [vmem:[%s1932_s20 + $0x1f8] sm:$0xff] }
  0x28   : > { %v205_v7 = vld [vmem:[%s1932_s20 + $0xf8] sm:$0xff] }
  0x2a   : > { %1550 = vmatmul.msk.f32.gmra.mxu0 %vm243_vm0, %v177_v13 }
  0x2b   : > { %1566 = vmatmul.msk.f32.gmra.mxu1 %vm243_vm0, %v193_v14 }
  0x2c   : > { %1582 = vmatmul.msk.f32.gmra.mxu2 %vm243_vm0, %v209_v15 }
  0x2d   : > { %1598 = vmatmul.msk.f32.gmra.mxu3 %vm243_vm0, %v225_v16 }
  0x32   : > { %1551 = vmatmul.msk.f32.gmra.mxu0 %vm243_vm0, %v178_v17 }
  0x33   : > { %1567 = vmatmul.msk.f32.gmra.mxu1 %vm243_vm0, %v194_v18 }
  0x34   : > { %1583 = vmatmul.msk.f32.gmra.mxu2 %vm243_vm0, %v210_v19 }
  0x35   : > { %1599 = vmatmul.msk.f32.gmra.mxu3 %vm243_vm0, %v226_v20 }
  0x3a   : > { %1552 = vmatmul.msk.f32.gmra.mxu0 %vm243_vm0, %v179_v21 }
  0x3b   : > { %1568 = vmatmul.msk.f32.gmra.mxu1 %vm243_vm0, %v195_v22 }
  0x3c   : > { %1584 = vmatmul.msk.f32.gmra.mxu2 %vm243_vm0, %v211_v23 }
  0x3d   : > { %1600 = vmatmul.msk.f32.gmra.mxu3 %vm243_vm0, %v227_v24 }
  0x42   : > { %1553 = vmatmul.msk.f32.gmra.mxu0 %vm243_vm0, %v180_v25 }
  0x43   : > { %1569 = vmatmul.msk.f32.gmra.mxu1 %vm243_vm0, %v196_v26 }
  0x44   : > { %1585 = vmatmul.msk.f32.gmra.mxu2 %vm243_vm0, %v212_v27 }
  0x45   : > { %1601 = vmatmul.msk.f32.gmra.mxu3 %vm243_vm0, %v228_v28 }
  0x4a   : > { %1554 = vmatmul.msk.f32.gmra.mxu0 %vm243_vm0, %v181_v29 }
  0x4b   : > { %1570 = vmatmul.msk.f32.gmra.mxu1 %vm243_vm0, %v197_v30 }
  0x4c   : > { %1586 = vmatmul.msk.f32.gmra.mxu2 %vm243_vm0, %v213_v31 }
  0x4d   : > { %1602 = vmatmul.msk.f32.gmra.mxu3 %vm243_vm0, %v229_v32 }
  0x52   : > { %1555 = vmatmul.msk.f32.gmra.mxu0 %vm243_vm0, %v182_v33 }
  0x53   : > { %1571 = vmatmul.msk.f32.gmra.mxu1 %vm243_vm0, %v198_v34 }
  0x54   : > { %1587 = vmatmul.msk.f32.gmra.mxu2 %vm243_vm0, %v214_v35 }
  0x55   : > { %1603 = vmatmul.msk.f32.gmra.mxu3 %vm243_vm0, %v230_v36 }
  0x5a   : > { %1556 = vmatmul.msk.f32.gmra.mxu0 %vm243_vm0, %v183_v37 }
  0x5b   : > { %1572 = vmatmul.msk.f32.gmra.mxu1 %vm243_vm0, %v199_v38 }
  0x5c   : > { %1588 = vmatmul.msk.f32.gmra.mxu2 %vm243_vm0, %v215_v39 }
  0x5d   : > { %1604 = vmatmul.msk.f32.gmra.mxu3 %vm243_vm0, %v231_v40 }
  0x62   : > { %1557 = vmatmul.msk.f32.gmra.mxu0 %vm243_vm0, %v184_v41 }
  0x63   : > { %1573 = vmatmul.msk.f32.gmra.mxu1 %vm243_vm0, %v200_v42 }
  0x64   : > { %1589 = vmatmul.msk.f32.gmra.mxu2 %vm243_vm0, %v216_v43 }
  0x65   : > { %1605 = vmatmul.msk.f32.gmra.mxu3 %vm243_vm0, %v232_v44 }
  0x6a   : > { %1558 = vmatmul.msk.f32.gmra.mxu0 %vm243_vm0, %v185_v45 }
  0x6b   : > { %1574 = vmatmul.msk.f32.gmra.mxu1 %vm243_vm0, %v201_v46 }
  0x6c   : > { %1590 = vmatmul.msk.f32.gmra.mxu2 %vm243_vm0, %v217_v47 }
  0x6d   : > { %1606 = vmatmul.msk.f32.gmra.mxu3 %vm243_vm0, %v233_v48 }
  0x72   : > { %1559 = vmatmul.msk.f32.gmra.mxu0 %vm243_vm0, %v186_v49 }
  0x73   : > { %1575 = vmatmul.msk.f32.gmra.mxu1 %vm243_vm0, %v202_v52 }
  0x74   : > { %1591 = vmatmul.msk.f32.gmra.mxu2 %vm243_vm0, %v218_v50 }
  0x75   : > { %1607 = vmatmul.msk.f32.gmra.mxu3 %vm243_vm0, %v234_v51 }
  0x7a   : > { %1560 = vmatmul.msk.f32.gmra.mxu0 %vm243_vm0, %v187_v54 }
  0x7b   : > { %1576 = vmatmul.msk.f32.gmra.mxu1 %vm243_vm0, %v203_v55 }
  0x7c   : > { %1592 = vmatmul.msk.f32.gmra.mxu2 %vm243_vm0, %v219_v53 }
  0x7d   : > { %1608 = vmatmul.msk.f32.gmra.mxu3 %vm243_vm0, %v235_v56 }
  0x82   : > { %1561 = vmatmul.msk.f32.gmra.mxu0 %vm243_vm0, %v188_v57 }
  0x83   : > { %1577 = vmatmul.msk.f32.gmra.mxu1 %vm243_vm0, %v204_v58 }
  0x84   : > { %1593 = vmatmul.msk.f32.gmra.mxu2 %vm243_vm0, %v220_v59 }
  0x85   : > { %1609 = vmatmul.msk.f32.gmra.mxu3 %vm243_vm0, %v236_v60 }
  0x8a   : > { %1562 = vmatmul.msk.f32.gmra.mxu0 %vm243_vm0, %v189_v4 }
  0x8b   : > { %1578 = vmatmul.msk.f32.gmra.mxu1 %vm243_vm0, %v205_v7 }
  0x8c   : > { %1594 = vmatmul.msk.f32.gmra.mxu2 %vm243_vm0, %v221_v5 }
  0x8d   : > { %1610 = vmatmul.msk.f32.gmra.mxu3 %vm243_vm0, %v237_v6 }
  0x8f   : > { %v456_v62 = vpop.f32.mrf.mxu0 }
  0x90   : > { %v504_v63 = vpop.f32.mrf.mxu1  ;;  %v2060_v0 = vadd.f32 %v2056_v61, %v456_v62 }
  0x91   : > { %v2063_v1 = vadd.f32 %v2056_v61, %v504_v63 }
  0x92   : > { %v649_v3 = vsel %vm648_vm1, %v2060_v0, -inf }
  0x93   : > { %v697_v2 = vsel %vm648_vm1, %v2063_v1, -inf  ;;  %650 = vmax.xlane.f32.xlu0 %v649_v3 }
  0x94   : > { %698 = vmax.xlane.f32.xlu1 %v697_v2 }
  0x97   : > { %v552_v8 = vpop.f32.mrf.mxu2  ;;  %v459_v12 = vpop.f32.mrf.mxu0 }
  0x98   : > { %v600_v9 = vpop.f32.mrf.mxu3  ;;  %v2078_v10 = vadd.f32 %v2056_v61, %v552_v8  ;;  %v507_v13 = vpop.f32.mrf.mxu1  ;;  %v2091_v17 = vadd.f32 %v2056_v61, %v459_v12 }
  0x99   : > { %v2081_v11 = vadd.f32 %v2056_v61, %v600_v9  ;;  %v2088_v16 = vadd.f32 %v2056_v61, %v507_v13 }
  0x9a   : > { %v745_v14 = vsel %vm648_vm1, %v2078_v10, -inf  ;;  %v652_v24 = vsel %vm648_vm1, %v2091_v17, -inf }
  0x9b   : > { %746 = vmax.xlane.f32.xlu2 %v745_v14  ;;  %v793_v15 = vsel %vm648_vm1, %v2081_v11, -inf  ;;  %v700_v21 = vsel %vm648_vm1, %v2088_v16, -inf }
  0x9c   : > { %794 = vmax.xlane.f32.xlu0 %v793_v15 }
  0x9f   : > { %v555_v18 = vpop.f32.mrf.mxu2  ;;  %v462_v22 = vpop.f32.mrf.mxu0 }
  0xa0   : > { %v603_v19 = vpop.f32.mrf.mxu3  ;;  %v2103_v25 = vadd.f32 %v2056_v61, %v462_v22  ;;  %v510_v26 = vpop.f32.mrf.mxu1  ;;  %v2106_v27 = vadd.f32 %v2056_v61, %v555_v18 }
  0xa1   : > { %v2094_v20 = vadd.f32 %v2056_v61, %v603_v19  ;;  %v2121_v36 = vadd.f32 %v2056_v61, %v510_v26 }
  0xa2   : > { %v655_v31 = vsel %vm648_vm1, %v2103_v25, -inf  ;;  %v748_v34 = vsel %vm648_vm1, %v2106_v27, -inf }
  0xa3   : > { %v796_v23 = vsel %vm648_vm1, %v2094_v20, -inf  ;;  %701 = vmax.xlane.f32.xlu2 %v700_v21  ;;  %v703_v41 = vsel %vm648_vm1, %v2121_v36, -inf }
  0xa4   : > { %797 = vmax.xlane.f32.xlu1 %v796_v23  ;;  %653 = vmax.xlane.f32.xlu0 %v652_v24 }
  0xa7   : > { %v558_v28 = vpop.f32.mrf.mxu2  ;;  %v465_v32 = vpop.f32.mrf.mxu0 }
  0xa8   : > { %v606_v29 = vpop.f32.mrf.mxu3  ;;  %v2118_v35 = vadd.f32 %v2056_v61, %v558_v28  ;;  %v513_v38 = vpop.f32.mrf.mxu1  ;;  %v2133_v45 = vadd.f32 %v2056_v61, %v465_v32 }
  0xa9   : > { %v2109_v30 = vadd.f32 %v2056_v61, %v606_v29  ;;  %v2148_v53 = vadd.f32 %v2056_v61, %v513_v38 }
  0xaa   : > { %v751_v40 = vsel %vm648_vm1, %v2118_v35, -inf  ;;  %v658_v49 = vsel %vm648_vm1, %v2133_v45, -inf }
  0xab   : > { %v799_v33 = vsel %vm648_vm1, %v2109_v30, -inf  ;;  %v706_v58 = vsel %vm648_vm1, %v2148_v53, -inf }
  0xac   : > { %800 = vmax.xlane.f32.xlu2 %v799_v33  ;;  %656 = vmax.xlane.f32.xlu1 %v655_v31 }
  0xad   : > { %749 = vmax.xlane.f32.xlu0 %v748_v34 }
  0xaf   : > { %v561_v37 = vpop.f32.mrf.mxu2  ;;  %v468_v42 = vpop.f32.mrf.mxu0 }
  0xb0   : > { %v2124_v39 = vadd.f32 %v2056_v61, %v561_v37  ;;  %v609_v44 = vpop.f32.mrf.mxu3  ;;  %v2136_v46 = vadd.f32 %v2056_v61, %v468_v42  ;;  %v516_v51 = vpop.f32.mrf.mxu1 }
  0xb1   : > { %v2139_v47 = vadd.f32 %v2056_v61, %v609_v44  ;;  %v2151_v54 = vadd.f32 %v2056_v61, %v516_v51 }
  0xb2   : > { %v754_v43 = vsel %vm648_vm1, %v2124_v39, -inf  ;;  %v661_v48 = vsel %vm648_vm1, %v2136_v46, -inf }
  0xb3   : > { %v802_v50 = vsel %vm648_vm1, %v2139_v47, -inf  ;;  %v709_v57 = vsel %vm648_vm1, %v2151_v54, -inf }
  0xb4   : > { %755 = vmax.xlane.f32.xlu2 %v754_v43  ;;  %752 = vmax.xlane.f32.xlu1 %v751_v40 }
  0xb5   : > { %704 = vmax.xlane.f32.xlu0 %v703_v41 }
  0xb7   : > { %v564_v52 = vpop.f32.mrf.mxu2  ;;  %v471_v60 = vpop.f32.mrf.mxu0 }
  0xb8   : > { %v2154_v55 = vadd.f32 %v2056_v61, %v564_v52  ;;  %v612_v56 = vpop.f32.mrf.mxu3  ;;  %v519_v62 = vpop.f32.mrf.mxu1  ;;  %v2163_v63 = vadd.f32 %v2056_v61, %v471_v60 }
  0xb9   : > { %v2166_v2 = vadd.f32 %v2056_v61, %v612_v56  ;;  %v2169_v3 = vadd.f32 %v2056_v61, %v519_v62 }
  0xba   : > { %v757_v59 = vsel %vm648_vm1, %v2154_v55, -inf  ;;  %v664_v5 = vsel %vm648_vm1, %v2163_v63, -inf }
  0xbb   : > { %v805_v6 = vsel %vm648_vm1, %v2166_v2, -inf  ;;  %v712_v7 = vsel %vm648_vm1, %v2169_v3, -inf }
  0xbc   : > { %662 = vmax.xlane.f32.xlu2 %v661_v48  ;;  %659 = vmax.xlane.f32.xlu1 %v658_v49 }
  0xbd   : > { %803 = vmax.xlane.f32.xlu0 %v802_v50 }
  0xbf   : > { %v567_v4 = vpop.f32.mrf.mxu2  ;;  %v474_v9 = vpop.f32.mrf.mxu0 }
  0xc0   : > { %v615_v8 = vpop.f32.mrf.mxu3  ;;  %v2178_v12 = vadd.f32 %v2056_v61, %v567_v4  ;;  %v2184_v14 = vadd.f32 %v2056_v61, %v474_v9  ;;  %v522_v15 = vpop.f32.mrf.mxu1 }
  0xc1   : > { %v2181_v13 = vadd.f32 %v2056_v61, %v615_v8  ;;  %v2193_v24 = vadd.f32 %v2056_v61, %v522_v15 }
  0xc2   : > { %v760_v19 = vsel %vm648_vm1, %v2178_v12, -inf  ;;  %v667_v21 = vsel %vm648_vm1, %v2184_v14, -inf }
  0xc3   : > { %v808_v18 = vsel %vm648_vm1, %v2181_v13, -inf  ;;  %v715_v32 = vsel %vm648_vm1, %v2193_v24, -inf }
  0xc4   : > { %710 = vmax.xlane.f32.xlu2 %v709_v57  ;;  %707 = vmax.xlane.f32.xlu1 %v706_v58 }
  0xc5   : > { %758 = vmax.xlane.f32.xlu0 %v757_v59 }
  0xc7   : > { %v570_v22 = vpop.f32.mrf.mxu2  ;;  %v477_v29 = vpop.f32.mrf.mxu0 }
  0xc8   : > { %v618_v23 = vpop.f32.mrf.mxu3  ;;  %v2196_v26 = vadd.f32 %v2056_v61, %v570_v22  ;;  %v525_v34 = vpop.f32.mrf.mxu1  ;;  %v2208_v38 = vadd.f32 %v2056_v61, %v477_v29 }
  0xc9   : > { %v2199_v28 = vadd.f32 %v2056_v61, %v618_v23  ;;  %v2211_v40 = vadd.f32 %v2056_v61, %v525_v34 }
  0xca   : > { %v763_v31 = vsel %vm648_vm1, %v2196_v26, -inf  ;;  %v670_v44 = vsel %vm648_vm1, %v2208_v38, -inf }
  0xcb   : > { %v811_v33 = vsel %vm648_vm1, %v2199_v28, -inf  ;;  %v718_v43 = vsel %vm648_vm1, %v2211_v40, -inf }
  0xcc   : > { %665 = vmax.xlane.f32.xlu2 %v664_v5  ;;  %806 = vmax.xlane.f32.xlu1 %v805_v6 }
  0xcd   : > { %713 = vmax.xlane.f32.xlu0 %v712_v7 }
  0xcf   : > { %v573_v37 = vpop.f32.mrf.mxu2  ;;  %v480_v49 = vpop.f32.mrf.mxu0 }
  0xd0   : > { %v2214_v41 = vadd.f32 %v2056_v61, %v573_v37  ;;  %v621_v42 = vpop.f32.mrf.mxu3  ;;  %v528_v50 = vpop.f32.mrf.mxu1  ;;  %v2223_v51 = vadd.f32 %v2056_v61, %v480_v49 }
  0xd1   : > { %v2226_v52 = vadd.f32 %v2056_v61, %v621_v42  ;;  %v2229_v56 = vadd.f32 %v2056_v61, %v528_v50 }
  0xd2   : > { %v766_v48 = vsel %vm648_vm1, %v2214_v41, -inf  ;;  %v673_v58 = vsel %vm648_vm1, %v2223_v51, -inf }
  0xd3   : > { %v814_v59 = vsel %vm648_vm1, %v2226_v52, -inf  ;;  %v721_v60 = vsel %vm648_vm1, %v2229_v56, -inf }
  0xd4   : > { %809 = vmax.xlane.f32.xlu2 %v808_v18  ;;  %761 = vmax.xlane.f32.xlu1 %v760_v19 }
  0xd5   : > { %668 = vmax.xlane.f32.xlu0 %v667_v21 }
  0xd7   : > { %v576_v57 = vpop.f32.mrf.mxu2  ;;  %v483_v4 = vpop.f32.mrf.mxu0 }
  0xd8   : > { %v624_v62 = vpop.f32.mrf.mxu3  ;;  %v2238_v5 = vadd.f32 %v2056_v61, %v576_v57  ;;  %v2244_v7 = vadd.f32 %v2056_v61, %v483_v4  ;;  %v531_v8 = vpop.f32.mrf.mxu1 }
  0xd9   : > { %v2241_v6 = vadd.f32 %v2056_v61, %v624_v62  ;;  %v2253_v22 = vadd.f32 %v2056_v61, %v531_v8 }
  0xda   : > { %3150 = vst [vmem:[#allocation2_spill] sm:$0xff] %v2244_v7  ;;  %v769_v15 = vsel %vm648_vm1, %v2238_v5, -inf  ;;  %v676_v18 = vsel %vm648_vm1, %v2244_v7, -inf }
  0xdb   : > { %v817_v9 = vsel %vm648_vm1, %v2241_v6, -inf  ;;  %3151 = vst [vmem:[#allocation3_spill] sm:$0xff] %v2253_v22 }
  0xdc   : > { %764 = vmax.xlane.f32.xlu2 %v763_v31  ;;  %716 = vmax.xlane.f32.xlu1 %v715_v32 }
  0xdd   : > { %812 = vmax.xlane.f32.xlu0 %v811_v33  ;;  %v724_v33 = vsel %vm648_vm1, %v2253_v22, -inf }
  0xdf   : > { %v579_v19 = vpop.f32.mrf.mxu2  ;;  %v486_v31 = vpop.f32.mrf.mxu0 }
  0xe0   : > { %v627_v21 = vpop.f32.mrf.mxu3  ;;  %v2256_v23 = vadd.f32 %v2056_v61, %v579_v19  ;;  %v534_v37 = vpop.f32.mrf.mxu1 }
  0xe1   : > { %v2259_v29 = vadd.f32 %v2056_v61, %v627_v21 }
  0xe2   : > { %3152 = vst [vmem:[#allocation4_spill] sm:$0xff] %v2256_v23  ;;  %v772_v32 = vsel %vm648_vm1, %v2256_v23, -inf }
  0xe3   : > { %3153 = vst [vmem:[#allocation5_spill] sm:$0xff] %v2259_v29  ;;  %v820_v34 = vsel %vm648_vm1, %v2259_v29, -inf }
  0xe4   : > { %719 = vmax.xlane.f32.xlu2 %v718_v43  ;;  %671 = vmax.xlane.f32.xlu1 %v670_v44  ;;  %v2268_v43 = vadd.f32 %v2056_v61, %v486_v31  ;;  %v2271_v44 = vadd.f32 %v2056_v61, %v534_v37 }
  0xe5   : > { %767 = vmax.xlane.f32.xlu0 %v766_v48 }
  0xe6   : > { %3154 = vst [vmem:[#allocation6_spill] sm:$0xff] %v2268_v43  ;;  %v727_v50 = vsel %vm648_vm1, %v2271_v44, -inf  ;;  %v679_v57 = vsel %vm648_vm1, %v2268_v43, -inf }
  0xe7   : > { %v582_v42 = vpop.f32.mrf.mxu2  ;;  %3155 = vst [vmem:[#allocation7_spill] sm:$0xff] %v2271_v44 }
  0xe8   : > { %v2274_v48 = vadd.f32 %v2056_v61, %v582_v42  ;;  %v630_v49 = vpop.f32.mrf.mxu3 }
  0xe9   : > { %v2286_v4 = vadd.f32 %v2056_v61, %v630_v49 }
  0xea   : > { %3156 = vst [vmem:[#allocation8_spill] sm:$0xff] %v2274_v48 }
  0xeb   : > { %3158 = vst [vmem:[#allocation10_spill] sm:$0xff] %v2286_v4  ;;  %v823_v19 = vsel %vm648_vm1, %v2286_v4, -inf }
  0xec   : > { %674 = vmax.xlane.f32.xlu2 %v673_v58  ;;  %815 = vmax.xlane.f32.xlu1 %v814_v59  ;;  %v775_v58 = vsel %vm648_vm1, %v2274_v48, -inf  ;;  %v489_v59 = vpop.f32.mrf.mxu0 }
  0xed   : > { %722 = vmax.xlane.f32.xlu0 %v721_v60  ;;  %v537_v60 = vpop.f32.mrf.mxu1  ;;  %v2283_v62 = vadd.f32 %v2056_v61, %v489_v59 }
  0xee   : > { %v2289_v8 = vadd.f32 %v2056_v61, %v537_v60 }
  0xef   : > { %3157 = vst [vmem:[#allocation9_spill] sm:$0xff] %v2283_v62 }
  0xf0   : > { %3159 = vst [vmem:[#allocation11_spill] sm:$0xff] %v2289_v8  ;;  %v730_v21 = vsel %vm648_vm1, %v2289_v8, -inf  ;;  %v633_v31 = vpop.f32.mrf.mxu3 }
  0xf4   : > { %818 = vmax.xlane.f32.xlu2 %v817_v9  ;;  %770 = vmax.xlane.f32.xlu1 %v769_v15  ;;  %v585_v15 = vpop.f32.mrf.mxu2 }
  0xf5   : > { %677 = vmax.xlane.f32.xlu0 %v676_v18  ;;  %v682_v18 = vsel %vm648_vm1, %v2283_v62, -inf }
  0xfc   : > { %773 = vmax.xlane.f32.xlu2 %v772_v32  ;;  %725 = vmax.xlane.f32.xlu1 %v724_v33  ;;  %v492_v32 = vpop.f32.mrf.mxu0  ;;  %v2300_v33 = vadd.f32 %v2056_v61, %v585_v15  ;;  %v588_v15 = vpop.f32.mrf.mxu2 }
  0xfd   : > { %821 = vmax.xlane.f32.xlu0 %v820_v34  ;;  %v2303_v34 = vadd.f32 %v2056_v61, %v633_v31  ;;  %v2306_v37 = vadd.f32 %v2056_v61, %v492_v32 }
  0xfe   : > { %3160 = vst [vmem:[#allocation12_spill] sm:$0xff] %v2300_v33  ;;  %v778_v59 = vsel %vm648_vm1, %v2300_v33, -inf }
  0xff   : > { %3161 = vst [vmem:[#allocation13_spill] sm:$0xff] %v2303_v34  ;;  %v685_v60 = vsel %vm648_vm1, %v2306_v37, -inf }
 0x100   : > { %3162 = vst [vmem:[#allocation14_spill] sm:$0xff] %v2306_v37 }
 0x104   : > { %728 = vmax.xlane.f32.xlu2 %v727_v50  ;;  %680 = vmax.xlane.f32.xlu1 %v679_v57  ;;  %v540_v57 = vpop.f32.mrf.mxu1  ;;  %v495_v37 = vpop.f32.mrf.mxu0 }
 0x105   : > { %776 = vmax.xlane.f32.xlu0 %v775_v58  ;;  %v826_v58 = vsel %vm648_vm1, %v2303_v34, -inf }
 0x106   : > { %v2291_v9 = vpop.xlane.xlu0 %650 }
 0x107   : > { %v2308_v42 = vpop.xlane.xlu1 %698 }
 0x10c   : > { %683 = vmax.xlane.f32.xlu2 %v682_v18  ;;  %824 = vmax.xlane.f32.xlu1 %v823_v19  ;;  %v636_v18 = vpop.f32.mrf.mxu3  ;;  %v2321_v19 = vadd.f32 %v2056_v61, %v540_v57 }
 0x10d   : > { %731 = vmax.xlane.f32.xlu0 %v730_v21  ;;  %v2324_v21 = vadd.f32 %v2056_v61, %v588_v15  ;;  %v2327_v31 = vadd.f32 %v2056_v61, %v636_v18  ;;  %v591_v15 = vpop.f32.mrf.mxu2  ;;  %v2342_v18 = vadd.f32 %v2056_v61, %v495_v37 }
 0x10e   : > { %v2310_v49 = vpop.xlane.xlu2 %746  ;;  %3163 = vst [vmem:[#allocation15_spill] sm:$0xff] %v2321_v19  ;;  %v733_v57 = vsel %vm648_vm1, %v2321_v19, -inf  ;;  %v2348_v62 = vadd.f32 %v2056_v61, %v591_v15 }
 0x10f   : > { %v2312_v50 = vpop.xlane.xlu0 %794  ;;  %3164 = vst [vmem:[#allocation16_spill] sm:$0xff] %v2324_v21  ;;  %v688_v37 = vsel %vm648_vm1, %v2342_v18, -inf  ;;  %v2414_v7 = vsub.f32 %v2078_v10, %v2310_v49 }
 0x110   : > { %3165 = vst [vmem:[#allocation17_spill] sm:$0xff] %v2327_v31 }
 0x111   : > { %3166 = vst [vmem:[#allocation18_spill] sm:$0xff] %v2342_v18  ;;  %v969_v10 = vmul.f32 1.442695, %v2414_v7 }
 0x112   : > { %3168 = vst [vmem:[#allocation20_spill] sm:$0xff] %v2348_v62 }
 0x114   : > { %827 = vmax.xlane.f32.xlu2 %v826_v58  ;;  %779 = vmax.xlane.f32.xlu1 %v778_v59  ;;  %v781_v58 = vsel %vm648_vm1, %v2324_v21, -inf  ;;  %v829_v59 = vsel %vm648_vm1, %v2327_v31, -inf  ;;  %v639_v31 = vpop.f32.mrf.mxu3 }
 0x115   : > { %686 = vmax.xlane.f32.xlu0 %v685_v60  ;;  %v543_v60 = vpop.f32.mrf.mxu1  ;;  %v2366_v48 = vadd.f32 %v2056_v61, %v639_v31 }
 0x116   : > { %v2329_v32 = vpop.xlane.xlu2 %701  ;;  %v2345_v8 = vadd.f32 %v2056_v61, %v543_v60 }
 0x117   : > { %v2331_v34 = vpop.xlane.xlu1 %797  ;;  %v2333_v33 = vpop.xlane.xlu0 %653  ;;  %3170 = vst [vmem:[#allocation22_spill] sm:$0xff] %v2366_v48 }
 0x118   : > { %3167 = vst [vmem:[#allocation19_spill] sm:$0xff] %v2345_v8 }
 0x11c   : > { %782 = vmax.xlane.f32.xlu2 %v781_v58  ;;  %734 = vmax.xlane.f32.xlu1 %v733_v57  ;;  %v736_v58 = vsel %vm648_vm1, %v2345_v8, -inf  ;;  %v784_v57 = vsel %vm648_vm1, %v2348_v62, -inf  ;;  %v594_v62 = vpop.f32.mrf.mxu2 }
 0x11d   : > { %830 = vmax.xlane.f32.xlu0 %v829_v59  ;;  %v498_v59 = vpop.f32.mrf.mxu0  ;;  %v546_v60 = vpop.f32.mrf.mxu1 }
 0x11e   : > { %v2363_v15 = vadd.f32 %v2056_v61, %v498_v59  ;;  %v2369_v44 = vadd.f32 %v2056_v61, %v546_v60  ;;  %v2384_v60 = vadd.f32 %v2056_v61, %v594_v62 }
 0x11f   : > { %v2350_v21 = vpop.xlane.xlu2 %800  ;;  %v2352_v19 = vpop.xlane.xlu1 %656 }
 0x120   : > { %v2354_v4 = vpop.xlane.xlu0 %749  ;;  %3169 = vst [vmem:[#allocation21_spill] sm:$0xff] %v2363_v15  ;;  %v739_v31 = vsel %vm648_vm1, %v2369_v44, -inf }
 0x121   : > { %3171 = vst [vmem:[#allocation23_spill] sm:$0xff] %v2369_v44 }
 0x124   : > { %737 = vmax.xlane.f32.xlu2 %v736_v58  ;;  %689 = vmax.xlane.f32.xlu1 %v688_v37  ;;  %v691_v58 = vsel %vm648_vm1, %v2363_v15, -inf  ;;  %v832_v37 = vsel %vm648_vm1, %v2366_v48, -inf  ;;  %v597_v44 = vpop.f32.mrf.mxu2 }
 0x125   : > { %785 = vmax.xlane.f32.xlu0 %v784_v57  ;;  %v642_v57 = vpop.f32.mrf.mxu3  ;;  %v501_v59 = vpop.f32.mrf.mxu0 }
 0x126   : > { %v2387_v29 = vadd.f32 %v2056_v61, %v642_v57  ;;  %v2390_v23 = vadd.f32 %v2056_v61, %v501_v59  ;;  %v549_v59 = vpop.f32.mrf.mxu1 }
 0x127   : > { %v2371_v8 = vpop.xlane.xlu2 %755  ;;  %v2373_v18 = vpop.xlane.xlu1 %752 }
 0x128   : > { %v2375_v43 = vpop.xlane.xlu0 %704  ;;  %3172 = vst [vmem:[#allocation24_spill] sm:$0xff] %v2387_v29  ;;  %v835_v62 = vsel %vm648_vm1, %v2387_v29, -inf  ;;  %v694_v57 = vsel %vm648_vm1, %v2390_v23, -inf  ;;  %v2418_v29 = vadd.f32 %v2056_v61, %v549_v59  ;;  %v2444_v59 = vsub.f32 %v2091_v17, %v2333_v33 }
 0x129   : > { %3173 = vst [vmem:[#allocation25_spill] sm:$0xff] %v2390_v23 }
 0x12a   : > { %3174 = vst [vmem:[#allocation26_spill] sm:$0xff] %v2418_v29 }
 0x12c   : > { %692 = vmax.xlane.f32.xlu2 %v691_v58  ;;  %833 = vmax.xlane.f32.xlu1 %v832_v37  ;;  %v2400_v58 = vsub.f32 %v2063_v1, %v2308_v42  ;;  %v787_v37 = vsel %vm648_vm1, %v2384_v60, -inf }
 0x12d   : > { %740 = vmax.xlane.f32.xlu0 %v739_v31  ;;  %v2408_v31 = vsub.f32 %v2060_v0, %v2291_v9  ;;  %v645_v1 = vpop.f32.mrf.mxu3  ;;  %v2421_v0 = vadd.f32 %v2056_v61, %v597_v44 }
 0x12e   : > { %v937_v42 = vmul.f32 1.442695, %v2400_v58  ;;  %v2425_v23 = vadd.f32 %v2056_v61, %v645_v1  ;;  %v742_v61 = vsel %vm648_vm1, %v2418_v29, -inf }
 0x12f   : > { %v2392_v15 = vpop.xlane.xlu2 %662  ;;  %v2394_v48 = vpop.xlane.xlu1 %659  ;;  %3175 = vst [vmem:[#allocation27_spill] sm:$0xff] %v2421_v0  ;;  %v905_v9 = vmul.f32 1.442695, %v2408_v31  ;;  %v790_v44 = vsel %vm648_vm1, %v2421_v0, -inf }
 0x130   : > { %v2396_v22 = vpop.xlane.xlu0 %803  ;;  %3176 = vst [vmem:[#allocation28_spill] sm:$0xff] %v2425_v23  ;;  %1625 = vpow2.f32 %v937_v42  ;;  %v838_v1 = vsel %vm648_vm1, %v2425_v23, -inf  ;;  %v2450_v42 = vsub.f32 %v2088_v16, %v2329_v32  ;;  %v2463_v16 = vsub.f32 %v2094_v20, %v2331_v34 }
 0x131   : > { %1627 = vpow2.f32 %v905_v9  ;;  %v2467_v32 = vsub.f32 %v2106_v27, %v2354_v4 }
 0x132   : > { %1629 = vpow2.f32 %v969_v10  ;;  %v939_v0 = vmul.f32 1.442695, %v2450_v42  ;;  %v1003_v20 = vmul.f32 1.442695, %v2463_v16 }
 0x133   : > { %v971_v34 = vmul.f32 1.442695, %v2467_v32 }
 0x134   : > { %836 = vmax.xlane.f32.xlu2 %v835_v62  ;;  %788 = vmax.xlane.f32.xlu1 %v787_v37 }
 0x135   : > { %695 = vmax.xlane.f32.xlu0 %v694_v57  ;;  %v2436_v57 = vsub.f32 %v2081_v11, %v2312_v50  ;;  %v907_v50 = vmul.f32 1.442695, %v2444_v59 }
 0x136   : > { %v1626_v9 = vpop.eup %1625 }
 0x137   : > { %v2428_v49 = vpop.xlane.xlu2 %710  ;;  %v2430_v62 = vpop.xlane.xlu1 %707  ;;  %v1001_v11 = vmul.f32 1.442695, %v2436_v57 }
 0x138   : > { %v2432_v37 = vpop.xlane.xlu0 %758  ;;  %v1628_v23 = vpop.eup %1627 }
 0x139   : > { %v1630_v29 = vpop.eup %1629  ;;  %1631 = vpow2.f32 %v1001_v11 }
 0x13a   : > { %1633 = vpow2.f32 %v907_v50  ;;  %v1129_v11 = vsel %vm648_vm1, %v1630_v29, 0.0  ;;  %v2487_v29 = vsub.f32 %v2118_v35, %v2373_v18 }
 0x13b   : > { %1635 = vpow2.f32 %v939_v0 }
 0x13c   : > { %791 = vmax.xlane.f32.xlu2 %v790_v44  ;;  %743 = vmax.xlane.f32.xlu1 %v742_v61  ;;  %v2471_v44 = vsub.f32 %v2103_v25, %v2352_v19  ;;  %v1081_v61 = vsel %vm648_vm1, %v1626_v9, 0.0  ;;  %1637 = vpow2.f32 %v1003_v20  ;;  %v2491_v9 = vsub.f32 %v2121_v36, %v2375_v43 }
 0x13d   : > { %839 = vmax.xlane.f32.xlu0 %v838_v1  ;;  %v1033_v1 = vsel %vm648_vm1, %v1628_v23, 0.0  ;;  %1639 = vpow2.f32 %v971_v34  ;;  %v973_v35 = vmul.f32 1.442695, %v2487_v29 }
 0x13e   : > { %v909_v4 = vmul.f32 1.442695, %v2471_v44  ;;  %v941_v18 = vmul.f32 1.442695, %v2491_v9 }
 0x13f   : > { %v2455_v17 = vpop.xlane.xlu2 %665  ;;  %v2457_v33 = vpop.xlane.xlu1 %806 }
 0x140   : > { %v2459_v10 = vpop.xlane.xlu0 %713  ;;  %v1632_v27 = vpop.eup %1631  ;;  %1641 = vpow2.f32 %v909_v4 }
 0x141   : > { %v1634_v19 = vpop.eup %1633  ;;  %1643 = vpow2.f32 %v973_v35 }
 0x142   : > { %v1636_v23 = vpop.eup %1635  ;;  %1645 = vpow2.f32 %v941_v18 }
 0x143   : > { %v1084_v20 = vsel %vm648_vm1, %v1636_v23, 0.0  ;;  %v1638_v36 = vpop.eup %1637  ;;  %v2515_v23 = vsub.f32 %v2148_v53, %v2430_v62 }
 0x144   : > { %1082 = vadd.xlane.f32.xlu2 %v1081_v61  ;;  %1034 = vadd.xlane.f32.xlu1 %v1033_v1  ;;  %v2495_v61 = vsub.f32 %v2109_v30, %v2350_v21  ;;  %v1177_v1 = vsel %vm648_vm1, %v1632_v27, 0.0  ;;  %v1640_v21 = vpop.eup %1639 }
 0x145   : > { %1130 = vadd.xlane.f32.xlu0 %v1129_v11  ;;  %v1036_v11 = vsel %vm648_vm1, %v1634_v19, 0.0  ;;  %v2511_v19 = vsub.f32 %v2133_v45, %v2394_v48  ;;  %v943_v48 = vmul.f32 1.442695, %v2515_v23 }
 0x146   : > { %v1005_v43 = vmul.f32 1.442695, %v2495_v61  ;;  %v1642_v4 = vpop.eup %1641 }
 0x147   : > { %v2479_v0 = vpop.xlane.xlu2 %809  ;;  %v2481_v25 = vpop.xlane.xlu1 %761  ;;  %v1039_v35 = vsel %vm648_vm1, %v1642_v4, 0.0  ;;  %v911_v45 = vmul.f32 1.442695, %v2511_v19  ;;  %v2539_v4 = vsub.f32 %v2139_v47, %v2396_v22 }
 0x148   : > { %v2483_v50 = vpop.xlane.xlu0 %668  ;;  %1647 = vpow2.f32 %v1005_v43  ;;  %v1644_v53 = vpop.eup %1643 }
 0x149   : > { %1649 = vpow2.f32 %v911_v45  ;;  %v1007_v47 = vmul.f32 1.442695, %v2539_v4 }
 0x14a   : > { %1651 = vpow2.f32 %v943_v48 }
 0x14c   : > { %1178 = vadd.xlane.f32.xlu1 %v1177_v1  ;;  %1037 = vadd.xlane.f32.xlu2 %v1036_v11  ;;  %v2519_v1 = vsub.f32 %v2124_v39, %v2371_v8  ;;  %v1180_v11 = vsel %vm648_vm1, %v1638_v36, 0.0  ;;  %v1646_v8 = vpop.eup %1645 }
 0x14d   : > { %1085 = vadd.xlane.f32.xlu0 %v1084_v20  ;;  %v1132_v20 = vsel %vm648_vm1, %v1640_v21, 0.0  ;;  %v2535_v21 = vsub.f32 %v2136_v46, %v2392_v15 }
 0x14e   : > { %v975_v62 = vmul.f32 1.442695, %v2519_v1  ;;  %v1648_v43 = vpop.eup %1647 }
 0x14f   : > { %v2503_v34 = vpop.xlane.xlu2 %764  ;;  %v2505_v30 = vpop.xlane.xlu1 %716  ;;  %v1183_v46 = vsel %vm648_vm1, %v1648_v43, 0.0  ;;  %v913_v15 = vmul.f32 1.442695, %v2535_v21  ;;  %v2563_v43 = vsub.f32 %v2166_v2, %v2457_v33 }
 0x150   : > { %v2507_v27 = vpop.xlane.xlu0 %812  ;;  %1653 = vpow2.f32 %v975_v62  ;;  %v1650_v22 = vpop.eup %1649 }
 0x151   : > { %1655 = vpow2.f32 %v913_v15 }
 0x152   : > { %1657 = vpow2.f32 %v1007_v47 }
 0x154   : > { %1181 = vadd.xlane.f32.xlu2 %v1180_v11  ;;  %1133 = vadd.xlane.f32.xlu1 %v1132_v20  ;;  %v2543_v11 = vsub.f32 %v2151_v54, %v2428_v49  ;;  %v1135_v20 = vsel %vm648_vm1, %v1644_v53, 0.0  ;;  %v1652_v49 = vpop.eup %1651 }
 0x155   : > { %1040 = vadd.xlane.f32.xlu0 %v1039_v35  ;;  %v1087_v35 = vsel %vm648_vm1, %v1646_v8, 0.0  ;;  %v2559_v8 = vsub.f32 %v2154_v55, %v2432_v37  ;;  %v1009_v37 = vmul.f32 1.442695, %v2563_v43 }
 0x156   : > { %v945_v45 = vmul.f32 1.442695, %v2543_v11  ;;  %v1654_v62 = vpop.eup %1653 }
 0x157   : > { %v2527_v18 = vpop.xlane.xlu2 %719  ;;  %v2529_v39 = vpop.xlane.xlu1 %671  ;;  %v1138_v15 = vsel %vm648_vm1, %v1654_v62, 0.0  ;;  %v977_v55 = vmul.f32 1.442695, %v2559_v8  ;;  %v2587_v62 = vsub.f32 %v2178_v12, %v2481_v25 }
 0x158   : > { %v2531_v36 = vpop.xlane.xlu0 %767  ;;  %1659 = vpow2.f32 %v945_v45  ;;  %v1656_v2 = vpop.eup %1655 }
 0x159   : > { %1661 = vpow2.f32 %v977_v55 }
 0x15a   : > { %1663 = vpow2.f32 %v1009_v37 }
 0x15c   : > { %1136 = vadd.xlane.f32.xlu2 %v1135_v20  ;;  %1088 = vadd.xlane.f32.xlu1 %v1087_v35  ;;  %v2567_v20 = vsub.f32 %v2163_v63, %v2455_v17  ;;  %v1090_v35 = vsel %vm648_vm1, %v1652_v49, 0.0  ;;  %v1658_v17 = vpop.eup %1657  ;;  %v2583_v49 = vsub.f32 %v2169_v3, %v2459_v10  ;;  %v979_v10 = vmul.f32 1.442695, %v2587_v62 }
 0x15d   : > { %1184 = vadd.xlane.f32.xlu0 %v1183_v46  ;;  %v1042_v46 = vsel %vm648_vm1, %v1650_v22, 0.0 }
 0x15e   : > { %v915_v33 = vmul.f32 1.442695, %v2567_v20  ;;  %v1660_v22 = vpop.eup %1659  ;;  %v947_v3 = vmul.f32 1.442695, %v2583_v49 }
 0x15f   : > { %v2551_v48 = vpop.xlane.xlu2 %674  ;;  %v2553_v54 = vpop.xlane.xlu1 %815  ;;  %v1093_v55 = vsel %vm648_vm1, %v1660_v22, 0.0  ;;  %v2611_v22 = vsub.f32 %v2193_v24, %v2505_v30 }
 0x160   : > { %v2555_v53 = vpop.xlane.xlu0 %722  ;;  %1665 = vpow2.f32 %v915_v33  ;;  %v1662_v12 = vpop.eup %1661 }
 0x161   : > { %1667 = vpow2.f32 %v947_v3 }
 0x162   : > { %1669 = vpow2.f32 %v979_v10 }
 0x164   : > { %1091 = vadd.xlane.f32.xlu2 %v1090_v35  ;;  %1043 = vadd.xlane.f32.xlu1 %v1042_v46  ;;  %v2591_v35 = vsub.f32 %v2181_v13, %v2479_v0  ;;  %v1045_v46 = vsel %vm648_vm1, %v1656_v2, 0.0  ;;  %v1664_v0 = vpop.eup %1663 }
 0x165   : > { %1139 = vadd.xlane.f32.xlu0 %v1138_v15  ;;  %v1186_v15 = vsel %vm648_vm1, %v1658_v17, 0.0  ;;  %v2607_v17 = vsub.f32 %v2184_v14, %v2483_v50  ;;  %v949_v50 = vmul.f32 1.442695, %v2611_v22 }
 0x166   : > { %v1011_v25 = vmul.f32 1.442695, %v2591_v35  ;;  %v1666_v33 = vpop.eup %1665 }
 0x167   : > { %v2575_v47 = vpop.xlane.xlu2 %818  ;;  %v2577_v63 = vpop.xlane.xlu1 %770  ;;  %v1048_v3 = vsel %vm648_vm1, %v1666_v33, 0.0  ;;  %v917_v14 = vmul.f32 1.442695, %v2607_v17  ;;  %v2635_v33 = vsub.f32 %v2208_v38, %v2529_v39 }
 0x168   : > { %v2579_v45 = vpop.xlane.xlu0 %677  ;;  %1671 = vpow2.f32 %v1011_v25  ;;  %v1668_v24 = vpop.eup %1667 }
 0x169   : > { %1673 = vpow2.f32 %v917_v14 }
 0x16a   : > { %1675 = vpow2.f32 %v949_v50 }
 0x16c   : > { %1046 = vadd.xlane.f32.xlu2 %v1045_v46  ;;  %1187 = vadd.xlane.f32.xlu1 %v1186_v15  ;;  %v2615_v46 = vsub.f32 %v2196_v26, %v2503_v34  ;;  %v1189_v15 = vsel %vm648_vm1, %v1664_v0, 0.0  ;;  %v1670_v34 = vpop.eup %1669  ;;  %v2631_v0 = vsub.f32 %v2199_v28, %v2507_v27  ;;  %v919_v27 = vmul.f32 1.442695, %v2635_v33 }
 0x16d   : > { %1094 = vadd.xlane.f32.xlu0 %v1093_v55  ;;  %v1141_v55 = vsel %vm648_vm1, %v1662_v12, 0.0 }
 0x16e   : > { %v981_v30 = vmul.f32 1.442695, %v2615_v46  ;;  %v1672_v12 = vpop.eup %1671  ;;  %v1013_v28 = vmul.f32 1.442695, %v2631_v0 }
 0x16f   : > { %v2599_v37 = vpop.xlane.xlu2 %773  ;;  %v2601_v13 = vpop.xlane.xlu1 %725  ;;  %v1192_v14 = vsel %vm648_vm1, %v1672_v12, 0.0  ;;  %v2659_v12 = vsub.f32 %v2226_v52, %v2553_v54 }
 0x170   : > { %v2603_v2 = vpop.xlane.xlu0 %821  ;;  %1677 = vpow2.f32 %v981_v30  ;;  %v1674_v38 = vpop.eup %1673 }
 0x171   : > { %1679 = vpow2.f32 %v1013_v28 }
 0x172   : > { %1681 = vpow2.f32 %v919_v27 }
 0x174   : > { %1190 = vadd.xlane.f32.xlu2 %v1189_v15  ;;  %1142 = vadd.xlane.f32.xlu1 %v1141_v55  ;;  %v2639_v15 = vsub.f32 %v2211_v40, %v2527_v18  ;;  %v1144_v55 = vsel %vm648_vm1, %v1670_v34, 0.0  ;;  %v1676_v18 = vpop.eup %1675  ;;  %v2655_v34 = vsub.f32 %v2214_v41, %v2531_v36  ;;  %v1015_v36 = vmul.f32 1.442695, %v2659_v12 }
 0x175   : > { %1049 = vadd.xlane.f32.xlu0 %v1048_v3  ;;  %v1096_v3 = vsel %vm648_vm1, %v1668_v24, 0.0 }
 0x176   : > { %v951_v39 = vmul.f32 1.442695, %v2639_v15  ;;  %v1678_v24 = vpop.eup %1677  ;;  %v983_v41 = vmul.f32 1.442695, %v2655_v34 }
 0x177   : > { %v2623_v10 = vpop.xlane.xlu2 %728  ;;  %v2625_v26 = vpop.xlane.xlu1 %680  ;;  %v1147_v28 = vsel %vm648_vm1, %v1678_v24, 0.0  ;;  %v2683_v24 = vsub.f32 %v2238_v5, %v2577_v63 }
 0x178   : > { %v2627_v25 = vpop.xlane.xlu0 %776  ;;  %1683 = vpow2.f32 %v951_v39  ;;  %v1680_v52 = vpop.eup %1679 }
 0x179   : > { %1685 = vpow2.f32 %v983_v41  ;;  %3178 = vst [vmem:[#allocation30_spill] sm:$0xff] %v2683_v24 }
 0x17a   : > { %1687 = vpow2.f32 %v1015_v36 }
 0x17c   : > { %1145 = vadd.xlane.f32.xlu2 %v1144_v55  ;;  %1097 = vadd.xlane.f32.xlu1 %v1096_v3  ;;  %v2663_v55 = vsub.f32 %v2223_v51, %v2551_v48  ;;  %v1099_v3 = vsel %vm648_vm1, %v1676_v18, 0.0  ;;  %v1682_v48 = vpop.eup %1681  ;;  %v2679_v18 = vsub.f32 %v2229_v56, %v2555_v53  ;;  %v985_v53 = vmul.f32 1.442695, %v2683_v24 }
 0x17d   : > { %1193 = vadd.xlane.f32.xlu0 %v1192_v14  ;;  %v1051_v14 = vsel %vm648_vm1, %v1674_v38, 0.0 }
 0x17e   : > { %v921_v54 = vmul.f32 1.442695, %v2663_v55  ;;  %v1684_v38 = vpop.eup %1683  ;;  %3177 = vst [vmem:[#allocation29_spill] sm:$0xff] %v2679_v18  ;;  %v953_v56 = vmul.f32 1.442695, %v2679_v18 }
 0x17f   : > { %v2647_v50 = vpop.xlane.xlu2 %683  ;;  %v2649_v40 = vpop.xlane.xlu1 %824  ;;  %v1102_v41 = vsel %vm648_vm1, %v1684_v38, 0.0 }
 0x180   : > { %v2651_v30 = vpop.xlane.xlu0 %731  ;;  %1689 = vpow2.f32 %v921_v54  ;;  %v1686_v5 = vpop.eup %1685 }
 0x181   : > { %1691 = vpow2.f32 %v953_v56  ;;  %v1150_v24 = vsel %vm648_vm1, %v1686_v5, 0.0 }
 0x182   : > { %1693 = vpow2.f32 %v985_v53 }
 0x184   : > { %1100 = vadd.xlane.f32.xlu2 %v1099_v3  ;;  %1052 = vadd.xlane.f32.xlu1 %v1051_v14  ;;  %v2687_v3 = vsub.f32 %v2241_v6, %v2575_v47  ;;  %v1054_v14 = vsel %vm648_vm1, %v1682_v48, 0.0  ;;  %v1688_v47 = vpop.eup %1687  ;;  %v3180_v48 = vld [vmem:[#allocation2_spill] sm:$0xff] }
 0x185   : > { %1148 = vadd.xlane.f32.xlu0 %v1147_v28  ;;  %v1195_v28 = vsel %vm648_vm1, %v1680_v52, 0.0  ;;  %v2703_v38 = vsub.f32 %v3180_v48, %v2579_v45  ;;  %v1198_v18 = vsel %vm648_vm1, %v1688_v47, 0.0 }
 0x186   : > { %3179 = vst [vmem:[#allocation31_spill] sm:$0xff] %v2687_v3  ;;  %v1017_v63 = vmul.f32 1.442695, %v2687_v3  ;;  %v1690_v52 = vpop.eup %1689 }
 0x187   : > { %v2671_v27 = vpop.xlane.xlu2 %827  ;;  %v2673_v51 = vpop.xlane.xlu1 %779  ;;  %3181 = vst [vmem:[#allocation2_spill] sm:$0xff] %v2703_v38  ;;  %v1057_v56 = vsel %vm648_vm1, %v1690_v52, 0.0  ;;  %v923_v45 = vmul.f32 1.442695, %v2703_v38  ;;  %v3188_v52 = vld [vmem:[#allocation6_spill] sm:$0xff] }
 0x188   : > { %v2675_v39 = vpop.xlane.xlu0 %686  ;;  %1695 = vpow2.f32 %v1017_v63 }
 0x189   : > { %1697 = vpow2.f32 %v923_v45 }
 0x18c   : > { %1055 = vadd.xlane.f32.xlu2 %v1054_v14  ;;  %1196 = vadd.xlane.f32.xlu1 %v1195_v28  ;;  %v3182_v14 = vld [vmem:[#allocation3_spill] sm:$0xff] }
 0x18d   : > { %1103 = vadd.xlane.f32.xlu0 %v1102_v41  ;;  %v2707_v28 = vsub.f32 %v3182_v14, %v2601_v13  ;;  %v3184_v41 = vld [vmem:[#allocation4_spill] sm:$0xff]  ;;  %v1692_v13 = vpop.eup %1691 }
 0x18e   : > { %v2711_v3 = vsub.f32 %v3184_v41, %v2599_v37  ;;  %v1694_v14 = vpop.eup %1693  ;;  %v2731_v41 = vsub.f32 %v3188_v52, %v2625_v26 }
 0x18f   : > { %v2695_v36 = vpop.xlane.xlu2 %782  ;;  %v2697_v6 = vpop.xlane.xlu1 %734  ;;  %3183 = vst [vmem:[#allocation3_spill] sm:$0xff] %v2707_v28  ;;  %v955_v53 = vmul.f32 1.442695, %v2707_v28  ;;  %v1153_v38 = vsel %vm648_vm1, %v1694_v14, 0.0  ;;  %v1105_v28 = vsel %vm648_vm1, %v1692_v13, 0.0 }
 0x190   : > { %v2699_v54 = vpop.xlane.xlu0 %830  ;;  %3185 = vst [vmem:[#allocation4_spill] sm:$0xff] %v2711_v3  ;;  %v987_v63 = vmul.f32 1.442695, %v2711_v3  ;;  %v1696_v5 = vpop.eup %1695 }
 0x191   : > { %1699 = vpow2.f32 %v955_v53  ;;  %3189 = vst [vmem:[#allocation6_spill] sm:$0xff] %v2731_v41  ;;  %v1201_v45 = vsel %vm648_vm1, %v1696_v5, 0.0  ;;  %v925_v53 = vmul.f32 1.442695, %v2731_v41  ;;  %v1698_v26 = vpop.eup %1697  ;;  %v3194_v5 = vld [vmem:[#allocation10_spill] sm:$0xff] }
 0x192   : > { %1701 = vpow2.f32 %v987_v63  ;;  %v1060_v41 = vsel %vm648_vm1, %v1698_v26, 0.0 }
 0x194   : > { %1199 = vadd.xlane.f32.xlu2 %v1198_v18  ;;  %1151 = vadd.xlane.f32.xlu1 %v1150_v24  ;;  %v3186_v18 = vld [vmem:[#allocation5_spill] sm:$0xff] }
 0x195   : > { %1058 = vadd.xlane.f32.xlu0 %v1057_v56  ;;  %v2727_v24 = vsub.f32 %v3186_v18, %v2603_v2  ;;  %v3190_v56 = vld [vmem:[#allocation7_spill] sm:$0xff] }
 0x196   : > { %v2735_v3 = vsub.f32 %v3190_v56, %v2623_v10  ;;  %v2755_v56 = vsub.f32 %v3194_v5, %v2649_v40 }
 0x197   : > { %v2719_v48 = vpop.xlane.xlu2 %737  ;;  %v2721_v37 = vpop.xlane.xlu1 %689  ;;  %3187 = vst [vmem:[#allocation5_spill] sm:$0xff] %v2727_v24  ;;  %v1019_v2 = vmul.f32 1.442695, %v2727_v24 }
 0x198   : > { %v2723_v47 = vpop.xlane.xlu0 %785  ;;  %3191 = vst [vmem:[#allocation7_spill] sm:$0xff] %v2735_v3  ;;  %v957_v63 = vmul.f32 1.442695, %v2735_v3  ;;  %v1700_v52 = vpop.eup %1699 }
 0x199   : > { %v1702_v13 = vpop.eup %1701  ;;  %1703 = vpow2.f32 %v1019_v2  ;;  %3195 = vst [vmem:[#allocation10_spill] sm:$0xff] %v2755_v56  ;;  %v1108_v24 = vsel %vm648_vm1, %v1700_v52, 0.0 }
 0x19a   : > { %1705 = vpow2.f32 %v925_v53  ;;  %v1156_v2 = vsel %vm648_vm1, %v1702_v13, 0.0  ;;  %v1021_v53 = vmul.f32 1.442695, %v2755_v56  ;;  %v3200_v13 = vld [vmem:[#allocation12_spill] sm:$0xff] }
 0x19b   : > { %1707 = vpow2.f32 %v957_v63 }
 0x19c   : > { %1154 = vadd.xlane.f32.xlu2 %v1153_v38  ;;  %1106 = vadd.xlane.f32.xlu1 %v1105_v28  ;;  %v3192_v38 = vld [vmem:[#allocation8_spill] sm:$0xff] }
 0x19d   : > { %1202 = vadd.xlane.f32.xlu0 %v1201_v45  ;;  %v2751_v28 = vsub.f32 %v3192_v38, %v2627_v25  ;;  %v3196_v45 = vld [vmem:[#allocation9_spill] sm:$0xff] }
 0x19e   : > { %v2759_v3 = vsub.f32 %v3196_v45, %v2647_v50  ;;  %v2779_v45 = vsub.f32 %v3200_v13, %v2673_v51  ;;  %v3203_v51 = vld [vmem:[#allocation14_spill] sm:$0xff] }
 0x19f   : > { %v2743_v18 = vpop.xlane.xlu2 %692  ;;  %v2745_v10 = vpop.xlane.xlu1 %833  ;;  %3193 = vst [vmem:[#allocation8_spill] sm:$0xff] %v2751_v28  ;;  %v989_v25 = vmul.f32 1.442695, %v2751_v28 }
 0x1a0   : > { %v2747_v14 = vpop.xlane.xlu0 %740  ;;  %3197 = vst [vmem:[#allocation9_spill] sm:$0xff] %v2759_v3  ;;  %v1704_v40 = vpop.eup %1703  ;;  %v927_v63 = vmul.f32 1.442695, %v2759_v3 }
 0x1a1   : > { %v1706_v5 = vpop.eup %1705  ;;  %1709 = vpow2.f32 %v989_v25  ;;  %v1204_v56 = vsel %vm648_vm1, %v1704_v40, 0.0 }
 0x1a2   : > { %v1708_v26 = vpop.eup %1707  ;;  %1711 = vpow2.f32 %v1021_v53  ;;  %v1063_v28 = vsel %vm648_vm1, %v1706_v5, 0.0  ;;  %v991_v53 = vmul.f32 1.442695, %v2779_v45  ;;  %v3205_v5 = vld [vmem:[#allocation15_spill] sm:$0xff] }
 0x1a3   : > { %1713 = vpow2.f32 %v927_v63  ;;  %v1111_v25 = vsel %vm648_vm1, %v1708_v26, 0.0  ;;  %v2792_v63 = vsub.f32 %v3203_v51, %v2675_v39  ;;  %v2797_v13 = vsub.f32 %v3205_v5, %v2697_v6  ;;  %v3206_v51 = vld [vmem:[#allocation16_spill] sm:$0xff] }
 0x1a4   : > { %1109 = vadd.xlane.f32.xlu2 %v1108_v24  ;;  %1061 = vadd.xlane.f32.xlu1 %v1060_v41  ;;  %v3198_v24 = vld [vmem:[#allocation11_spill] sm:$0xff] }
 0x1a5   : > { %1157 = vadd.xlane.f32.xlu0 %v1156_v2  ;;  %v2775_v41 = vsub.f32 %v3198_v24, %v2651_v30  ;;  %v3201_v2 = vld [vmem:[#allocation13_spill] sm:$0xff]  ;;  %v929_v39 = vmul.f32 1.442695, %v2792_v63  ;;  %v961_v6 = vmul.f32 1.442695, %v2797_v13 }
 0x1a6   : > { %v2783_v3 = vsub.f32 %v3201_v2, %v2671_v27  ;;  %3204 = vst [vmem:[#allocation13_spill] sm:$0xff] %v2792_v63 }
 0x1a7   : > { %v2767_v38 = vpop.xlane.xlu2 %836  ;;  %v2769_v50 = vpop.xlane.xlu1 %788  ;;  %3199 = vst [vmem:[#allocation11_spill] sm:$0xff] %v2775_v41  ;;  %v959_v30 = vmul.f32 1.442695, %v2775_v41 }
 0x1a8   : > { %v2771_v52 = vpop.xlane.xlu0 %695  ;;  %3202 = vst [vmem:[#allocation12_spill] sm:$0xff] %v2783_v3  ;;  %v1710_v24 = vpop.eup %1709  ;;  %v1023_v27 = vmul.f32 1.442695, %v2783_v3  ;;  %v2809_v3 = vsub.f32 %v3206_v51, %v2695_v36  ;;  %v3209_v36 = vld [vmem:[#allocation18_spill] sm:$0xff] }
 0x1a9   : > { %v1712_v40 = vpop.eup %1711  ;;  %1715 = vpow2.f32 %v959_v30  ;;  %v3207_v30 = vld [vmem:[#allocation17_spill] sm:$0xff]  ;;  %v2821_v51 = vsub.f32 %v3209_v36, %v2721_v37 }
 0x1aa   : > { %v1714_v2 = vpop.eup %1713  ;;  %1717 = vpow2.f32 %v991_v53  ;;  %v1207_v5 = vsel %vm648_vm1, %v1712_v40, 0.0  ;;  %v2816_v53 = vsub.f32 %v3207_v30, %v2699_v54 }
 0x1ab   : > { %1719 = vpow2.f32 %v1023_v27  ;;  %v1066_v41 = vsel %vm648_vm1, %v1714_v2, 0.0  ;;  %v993_v27 = vmul.f32 1.442695, %v2809_v3  ;;  %3210 = vst [vmem:[#allocation15_spill] sm:$0xff] %v2821_v51  ;;  %v931_v37 = vmul.f32 1.442695, %v2821_v51 }
 0x1ac   : > { %1064 = vadd.xlane.f32.xlu2 %v1063_v28  ;;  %1205 = vadd.xlane.f32.xlu1 %v1204_v56  ;;  %1721 = vpow2.f32 %v929_v39  ;;  %3208 = vst [vmem:[#allocation14_spill] sm:$0xff] %v2816_v53  ;;  %v3211_v39 = vld [vmem:[#allocation19_spill] sm:$0xff] }
 0x1ad   : > { %1112 = vadd.xlane.f32.xlu0 %v1111_v25  ;;  %v1159_v25 = vsel %vm648_vm1, %v1710_v24, 0.0  ;;  %1723 = vpow2.f32 %v961_v6  ;;  %v2827_v6 = vsub.f32 %v3211_v39, %v2719_v48  ;;  %v3214_v48 = vld [vmem:[#allocation21_spill] sm:$0xff] }
 0x1af   : > { %v2799_v28 = vpop.xlane.xlu2 %791  ;;  %v2801_v56 = vpop.xlane.xlu1 %743 }
 0x1b0   : > { %v2803_v26 = vpop.xlane.xlu0 %839  ;;  %v1716_v24 = vpop.eup %1715 }
 0x1b1   : > { %v1114_v54 = vsel %vm648_vm1, %v1716_v24, 0.0 }
 0x1b4   : > { %1208 = vadd.xlane.f32.xlu2 %v1207_v5  ;;  %1160 = vadd.xlane.f32.xlu1 %v1159_v25  ;;  %v1718_v5 = vpop.eup %1717 }
 0x1b5   : > { %1067 = vadd.xlane.f32.xlu0 %v1066_v41  ;;  %v1720_v2 = vpop.eup %1719  ;;  %v1025_v41 = vmul.f32 1.442695, %v2816_v53  ;;  %v1162_v30 = vsel %vm648_vm1, %v1718_v5, 0.0  ;;  %v963_v5 = vmul.f32 1.442695, %v2827_v6 }
 0x1b6   : > { %v1722_v36 = vpop.eup %1721 }
 0x1b7   : > { %v1083_v63 = vpop.xlane.xlu2 %1082  ;;  %v1035_v40 = vpop.xlane.xlu1 %1034 }
 0x1b8   : > { %1725 = vlog2.f32 %v1083_v63  ;;  %v1131_v25 = vpop.xlane.xlu0 %1130  ;;  %v1210_v63 = vsel %vm648_vm1, %v1720_v2, 0.0 }
 0x1b9   : > { %1727 = vlog2.f32 %v1035_v40  ;;  %v1724_v40 = vpop.eup %1723 }
 0x1ba   : > { %1729 = vlog2.f32 %v1131_v25  ;;  %v3212_v25 = vld [vmem:[#allocation20_spill] sm:$0xff] }
 0x1bb   : > { %1731 = vpow2.f32 %v993_v27  ;;  %v2834_v53 = vsub.f32 %v3212_v25, %v2723_v47  ;;  %v2838_v27 = vsub.f32 %v3214_v48, %v2743_v18  ;;  %v1069_v48 = vsel %vm648_vm1, %v1722_v36, 0.0 }
 0x1bc   : > { %1163 = vadd.xlane.f32.xlu2 %v1162_v30  ;;  %1115 = vadd.xlane.f32.xlu1 %v1114_v54  ;;  %1733 = vpow2.f32 %v1025_v41  ;;  %v2843_v54 = vsub.f32 %v2384_v60, %v2769_v50 }
 0x1bd   : > { %3213 = vst [vmem:[#allocation16_spill] sm:$0xff] %v2834_v53  ;;  %1211 = vadd.xlane.f32.xlu0 %v1210_v63  ;;  %1735 = vpow2.f32 %v931_v37  ;;  %v995_v63 = vmul.f32 1.442695, %v2834_v53  ;;  %v933_v25 = vmul.f32 1.442695, %v2838_v27  ;;  %v1117_v53 = vsel %vm648_vm1, %v1724_v40, 0.0 }
 0x1be   : > { %v1726_v24 = vpop.eup %1725  ;;  %v3216_v40 = vld [vmem:[#allocation26_spill] sm:$0xff] }
 0x1bf   : > { %v1728_v39 = vpop.eup %1727  ;;  %v1258_v2 = vmul.f32 0.6931472, %v1726_v24  ;;  %v1179_v30 = vpop.xlane.xlu1 %1178 }
 0x1c0   : > { %v1038_v51 = vpop.xlane.xlu2 %1037  ;;  %v1730_v47 = vpop.eup %1729  ;;  %v1226_v18 = vmul.f32 0.6931472, %v1728_v39  ;;  %1737 = vlog2.f32 %v1179_v30  ;;  %v997_v39 = vmul.f32 1.442695, %v2843_v54 }
 0x1c1   : > { %v1086_v41 = vpop.xlane.xlu0 %1085  ;;  %v1732_v37 = vpop.eup %1731  ;;  %v1369_v60 = vsub.f32 %v2400_v58, %v1258_v2  ;;  %v1290_v50 = vmul.f32 0.6931472, %v1730_v47  ;;  %1739 = vlog2.f32 %v1038_v51  ;;  %v2873_v47 = vsub.f32 %v3216_v40, %v2801_v56  ;;  %v3218_v40 = vld [vmem:[#allocation22_spill] sm:$0xff] }
 0x1c2   : > { %v1353_v24 = vsub.f32 %v2408_v31, %v1226_v18  ;;  %1741 = vlog2.f32 %v1086_v41  ;;  %v1734_v58 = vpop.eup %1733  ;;  %v1165_v51 = vsel %vm648_vm1, %v1732_v37, 0.0 }
 0x1c3   : > { %1743 = vpow2.f32 %v963_v5  ;;  %1433 = vst.msk [vmem:[%s2850_s25 + $0x80] sm:$0xff] %vm648_vm1, %v1369_v60  ;;  %v1385_v30 = vsub.f32 %v2414_v7, %v1290_v50  ;;  %v1736_v31 = vpop.eup %1735  ;;  %v3215_v5 = vld [vmem:[#allocation23_spill] sm:$0xff]  ;;  %v1213_v56 = vsel %vm648_vm1, %v1734_v58, 0.0 }
 0x1c4   : > { %1417 = vst.msk [vmem:[%s2850_s25] sm:$0xff] %vm648_vm1, %v1353_v24  ;;  %1118 = vadd.xlane.f32.xlu2 %v1117_v53  ;;  %1070 = vadd.xlane.f32.xlu1 %v1069_v48  ;;  %1745 = vpow2.f32 %v995_v63  ;;  %v2869_v2 = vsub.f32 %v3215_v5, %v2747_v14  ;;  %v1072_v5 = vsel %vm648_vm1, %v1736_v31, 0.0 }
 0x1c5   : > { %1449 = vst.msk [vmem:[%s2850_s25 + $0x100] sm:$0xff] %vm648_vm1, %v1385_v30  ;;  %1166 = vadd.xlane.f32.xlu0 %v1165_v51  ;;  %1747 = vpow2.f32 %v933_v25  ;;  %v3217_v30 = vld [vmem:[#allocation27_spill] sm:$0xff] }
 0x1c6   : > { %v1738_v36 = vpop.eup %1737  ;;  %1749 = vpow2.f32 %v997_v39  ;;  %v965_v24 = vmul.f32 1.442695, %v2869_v2  ;;  %v2881_v51 = vsub.f32 %v3217_v30, %v2799_v28  ;;  %v2893_v28 = vsub.f32 %v3218_v40, %v2745_v10 }
 0x1c7   : > { %v1740_v7 = vpop.eup %1739  ;;  %v1322_v53 = vmul.f32 0.6931472, %v1738_v36  ;;  %v1134_v41 = vpop.xlane.xlu1 %1133  ;;  %v967_v36 = vmul.f32 1.442695, %v2873_v47 }
 0x1c8   : > { %v1182_v18 = vpop.xlane.xlu2 %1181  ;;  %v1742_v37 = vpop.eup %1741  ;;  %v1228_v63 = vmul.f32 0.6931472, %v1740_v7 }
 0x1c9   : > { %1751 = vlog2.f32 %v1182_v18  ;;  %v1041_v60 = vpop.xlane.xlu0 %1040  ;;  %v1744_v50 = vpop.eup %1743  ;;  %v1401_v25 = vsub.f32 %v2436_v57, %v1322_v53  ;;  %v1260_v14 = vmul.f32 0.6931472, %v1742_v37 }
 0x1ca   : > { %1753 = vlog2.f32 %v1134_v41  ;;  %v1354_v48 = vsub.f32 %v2444_v59, %v1228_v63  ;;  %v1746_v39 = vpop.eup %1745  ;;  %v1120_v59 = vsel %vm648_vm1, %v1744_v50, 0.0  ;;  %v3220_v41 = vld [vmem:[#allocation25_spill] sm:$0xff]  ;;  %v999_v63 = vmul.f32 1.442695, %v2881_v51 }
 0x1cb   : > { %1755 = vlog2.f32 %v1041_v60  ;;  %1465 = vst.msk [vmem:[%s2850_s25 + $0x180] sm:$0xff] %vm648_vm1, %v1401_v25  ;;  %v1370_v57 = vsub.f32 %v2450_v42, %v1260_v14  ;;  %v1748_v7 = vpop.eup %1747  ;;  %v3219_v42 = vld [vmem:[#allocation24_spill] sm:$0xff]  ;;  %v2903_v37 = vsub.f32 %v3220_v41, %v2771_v52 }
 0x1cc   : > { %1418 = vst.msk [vmem:[%s2850_s25 + $0x8] sm:$0xff] %vm648_vm1, %v1354_v48  ;;  %1073 = vadd.xlane.f32.xlu2 %v1072_v5  ;;  %1214 = vadd.xlane.f32.xlu1 %v1213_v56  ;;  %v1750_v58 = vpop.eup %1749  ;;  %1757 = vpow2.f32 %v965_v24  ;;  %v2899_v31 = vsub.f32 %v3219_v42, %v2767_v38  ;;  %v1027_v38 = vmul.f32 1.442695, %v2893_v28  ;;  %v1075_v40 = vsel %vm648_vm1, %v1748_v7, 0.0 }
 0x1cd   : > { %1434 = vst.msk [vmem:[%s2850_s25 + $0x88] sm:$0xff] %vm648_vm1, %v1370_v57  ;;  %1121 = vadd.xlane.f32.xlu0 %v1120_v59  ;;  %1759 = vpow2.f32 %v967_v36  ;;  %v1168_v36 = vsel %vm648_vm1, %v1746_v39, 0.0  ;;  %v935_v57 = vmul.f32 1.442695, %v2903_v37  ;;  %v1171_v59 = vsel %vm648_vm1, %v1750_v58, 0.0 }
 0x1ce   : > { %v1029_v52 = vmul.f32 1.442695, %v2899_v31 }
 0x1cf   : > { %v1752_v53 = vpop.eup %1751  ;;  %v1089_v50 = vpop.xlane.xlu1 %1088 }
 0x1d0   : > { %v1754_v18 = vpop.eup %1753  ;;  %v1324_v60 = vmul.f32 0.6931472, %v1752_v53  ;;  %v1137_v10 = vpop.xlane.xlu2 %1136 }
 0x1d1   : > { %v1756_v25 = vpop.eup %1755  ;;  %v1292_v14 = vmul.f32 0.6931472, %v1754_v18  ;;  %1761 = vlog2.f32 %v1137_v10  ;;  %v1185_v24 = vpop.xlane.xlu0 %1184 }
 0x1d2   : > { %v1402_v48 = vsub.f32 %v2463_v16, %v1324_v60  ;;  %v1230_v56 = vmul.f32 0.6931472, %v1756_v25  ;;  %1763 = vlog2.f32 %v1089_v50  ;;  %v1758_v16 = vpop.eup %1757 }
 0x1d3   : > { %v1386_v30 = vsub.f32 %v2467_v32, %v1292_v14  ;;  %1765 = vlog2.f32 %v1185_v24  ;;  %v1760_v32 = vpop.eup %1759 }
 0x1d4   : > { %1767 = vpow2.f32 %v999_v63  ;;  %1466 = vst.msk [vmem:[%s2850_s25 + $0x188] sm:$0xff] %vm648_vm1, %v1402_v48  ;;  %v1355_v5 = vsub.f32 %v2471_v44, %v1230_v56  ;;  %1172 = vadd.xlane.f32.xlu2 %v1171_v59  ;;  %1169 = vadd.xlane.f32.xlu1 %v1168_v36  ;;  %v3221_v44 = vld [vmem:[#allocation28_spill] sm:$0xff]  ;;  %v1126_v48 = vsel %vm648_vm1, %v1760_v32, 0.0  ;;  %v1123_v56 = vsel %vm648_vm1, %v1758_v16, 0.0 }
 0x1d5   : > { %1450 = vst.msk [vmem:[%s2850_s25 + $0x108] sm:$0xff] %vm648_vm1, %v1386_v30  ;;  %1769 = vpow2.f32 %v1027_v38  ;;  %1076 = vadd.xlane.f32.xlu0 %v1075_v40  ;;  %v2923_v42 = vsub.f32 %v3221_v44, %v2803_v26 }
 0x1d6   : > { %1419 = vst.msk [vmem:[%s2850_s25 + $0x10] sm:$0xff] %vm648_vm1, %v1355_v5  ;;  %1771 = vpow2.f32 %v1029_v52 }
 0x1d7   : > { %v1762_v39 = vpop.eup %1761  ;;  %1773 = vpow2.f32 %v935_v57  ;;  %v1044_v41 = vpop.xlane.xlu1 %1043  ;;  %v1031_v24 = vmul.f32 1.442695, %v2923_v42 }
 0x1d8   : > { %v1764_v53 = vpop.eup %1763  ;;  %v1294_v58 = vmul.f32 0.6931472, %v1762_v39  ;;  %v1092_v18 = vpop.xlane.xlu2 %1091 }
 0x1d9   : > { %v1766_v63 = vpop.eup %1765  ;;  %v1262_v60 = vmul.f32 0.6931472, %v1764_v53  ;;  %1775 = vlog2.f32 %v1092_v18  ;;  %v1140_v7 = vpop.xlane.xlu0 %1139 }
 0x1da   : > { %v1768_v10 = vpop.eup %1767  ;;  %v1387_v50 = vsub.f32 %v2487_v29, %v1294_v58  ;;  %v1326_v25 = vmul.f32 0.6931472, %v1766_v63  ;;  %1777 = vlog2.f32 %v1044_v41 }
 0x1db   : > { %v1371_v14 = vsub.f32 %v2491_v9, %v1262_v60  ;;  %1779 = vlog2.f32 %v1140_v7  ;;  %v1770_v26 = vpop.eup %1769  ;;  %v1174_v29 = vsel %vm648_vm1, %v1768_v10, 0.0 }
 0x1dc   : > { %1451 = vst.msk [vmem:[%s2850_s25 + $0x110] sm:$0xff] %vm648_vm1, %v1387_v50  ;;  %v1403_v38 = vsub.f32 %v2495_v61, %v1326_v25  ;;  %v1772_v52 = vpop.eup %1771  ;;  %1127 = vadd.xlane.f32.xlu2 %v1126_v48  ;;  %1124 = vadd.xlane.f32.xlu1 %v1123_v56  ;;  %1781 = vpow2.f32 %v1031_v24  ;;  %v1216_v58 = vsel %vm648_vm1, %v1770_v26, 0.0 }
 0x1dd   : > { %1435 = vst.msk [vmem:[%s2850_s25 + $0x90] sm:$0xff] %vm648_vm1, %v1371_v14  ;;  %v1774_v9 = vpop.eup %1773  ;;  %1175 = vadd.xlane.f32.xlu0 %v1174_v29  ;;  %v1219_v41 = vsel %vm648_vm1, %v1772_v52, 0.0 }
 0x1de   : > { %1467 = vst.msk [vmem:[%s2850_s25 + $0x190] sm:$0xff] %vm648_vm1, %v1403_v38  ;;  %v1078_v18 = vsel %vm648_vm1, %v1774_v9, 0.0 }
 0x1df   : > { %v1776_v30 = vpop.eup %1775  ;;  %v1188_v5 = vpop.xlane.xlu1 %1187 }
 0x1e0   : > { %v1778_v36 = vpop.eup %1777  ;;  %v1264_v61 = vmul.f32 0.6931472, %v1776_v30  ;;  %v1047_v57 = vpop.xlane.xlu2 %1046 }
 0x1e1   : > { %v1780_v59 = vpop.eup %1779  ;;  %v1232_v16 = vmul.f32 0.6931472, %v1778_v36  ;;  %1783 = vlog2.f32 %v1047_v57  ;;  %v1095_v40 = vpop.xlane.xlu0 %1094 }
 0x1e2   : > { %v1372_v32 = vsub.f32 %v2515_v23, %v1264_v61  ;;  %v1296_v39 = vmul.f32 0.6931472, %v1780_v59  ;;  %1785 = vlog2.f32 %v1188_v5  ;;  %v1782_v23 = vpop.eup %1781 }
 0x1e3   : > { %v1356_v53 = vsub.f32 %v2511_v19, %v1232_v16  ;;  %1787 = vlog2.f32 %v1095_v40  ;;  %v1222_v48 = vsel %vm648_vm1, %v1782_v23, 0.0 }
 0x1e4   : > { %1436 = vst.msk [vmem:[%s2850_s25 + $0x98] sm:$0xff] %vm648_vm1, %v1372_v32  ;;  %v1388_v44 = vsub.f32 %v2519_v1, %v1296_v39  ;;  %1217 = vadd.xlane.f32.xlu2 %v1216_v58  ;;  %1079 = vadd.xlane.f32.xlu1 %v1078_v18 }
 0x1e5   : > { %1420 = vst.msk [vmem:[%s2850_s25 + $0x18] sm:$0xff] %vm648_vm1, %v1356_v53  ;;  %1220 = vadd.xlane.f32.xlu0 %v1219_v41 }
 0x1e6   : > { %1452 = vst.msk [vmem:[%s2850_s25 + $0x118] sm:$0xff] %vm648_vm1, %v1388_v44 }
 0x1e7   : > { %v1784_v19 = vpop.eup %1783  ;;  %v1143_v7 = vpop.xlane.xlu1 %1142 }
 0x1e8   : > { %v1786_v63 = vpop.eup %1785  ;;  %v1234_v60 = vmul.f32 0.6931472, %v1784_v19  ;;  %v1191_v1 = vpop.xlane.xlu2 %1190 }
 0x1e9   : > { %v1788_v10 = vpop.eup %1787  ;;  %v1328_v50 = vmul.f32 0.6931472, %v1786_v63  ;;  %1789 = vlog2.f32 %v1191_v1  ;;  %v1050_v25 = vpop.xlane.xlu0 %1049 }
 0x1ea   : > { %v1357_v14 = vsub.f32 %v2535_v21, %v1234_v60  ;;  %v1266_v26 = vmul.f32 0.6931472, %v1788_v10  ;;  %1791 = vlog2.f32 %v1143_v7 }
 0x1eb   : > { %v1404_v24 = vsub.f32 %v2539_v4, %v1328_v50  ;;  %1793 = vlog2.f32 %v1050_v25 }
 0x1ec   : > { %1421 = vst.msk [vmem:[%s2850_s25 + $0x20] sm:$0xff] %vm648_vm1, %v1357_v14  ;;  %v1373_v38 = vsub.f32 %v2543_v11, %v1266_v26  ;;  %1223 = vadd.xlane.f32.xlu1 %v1222_v48 }
 0x1ed   : > { %1468 = vst.msk [vmem:[%s2850_s25 + $0x198] sm:$0xff] %vm648_vm1, %v1404_v24 }
 0x1ee   : > { %1437 = vst.msk [vmem:[%s2850_s25 + $0xa0] sm:$0xff] %vm648_vm1, %v1373_v38 }
 0x1ef   : > { %v1790_v56 = vpop.eup %1789  ;;  %v1098_v4 = vpop.xlane.xlu1 %1097 }
 0x1f0   : > { %v1792_v21 = vpop.eup %1791  ;;  %v1330_v52 = vmul.f32 0.6931472, %v1790_v56  ;;  %v1146_v29 = vpop.xlane.xlu2 %1145 }
 0x1f1   : > { %v1794_v9 = vpop.eup %1793  ;;  %v1298_v30 = vmul.f32 0.6931472, %v1792_v21  ;;  %1795 = vlog2.f32 %v1146_v29  ;;  %v1194_v36 = vpop.xlane.xlu0 %1193 }
 0x1f2   : > { %v1405_v11 = vsub.f32 %v2563_v43, %v1330_v52  ;;  %v1236_v61 = vmul.f32 0.6931472, %v1794_v9  ;;  %1797 = vlog2.f32 %v1098_v4 }
 0x1f3   : > { %v1389_v57 = vsub.f32 %v2559_v8, %v1298_v30  ;;  %1799 = vlog2.f32 %v1194_v36 }
 0x1f4   : > { %1469 = vst.msk [vmem:[%s2850_s25 + $0x1a0] sm:$0xff] %vm648_vm1, %v1405_v11  ;;  %v1358_v5 = vsub.f32 %v2567_v20, %v1236_v61 }
 0x1f5   : > { %1453 = vst.msk [vmem:[%s2850_s25 + $0x120] sm:$0xff] %vm648_vm1, %v1389_v57 }
 0x1f6   : > { %1422 = vst.msk [vmem:[%s2850_s25 + $0x28] sm:$0xff] %vm648_vm1, %v1358_v5 }
 0x1f7   : > { %v1796_v59 = vpop.eup %1795  ;;  %v1053_v32 = vpop.xlane.xlu1 %1052 }
 0x1f8   : > { %v1798_v16 = vpop.eup %1797  ;;  %v1300_v40 = vmul.f32 0.6931472, %v1796_v59  ;;  %v1101_v43 = vpop.xlane.xlu2 %1100 }
 0x1f9   : > { %v1800_v39 = vpop.eup %1799  ;;  %v1268_v53 = vmul.f32 0.6931472, %v1798_v16  ;;  %1801 = vlog2.f32 %v1101_v43  ;;  %v1149_v8 = vpop.xlane.xlu0 %1148 }
 0x1fa   : > { %v1390_v44 = vsub.f32 %v2587_v62, %v1300_v40  ;;  %v1332_v58 = vmul.f32 0.6931472, %v1800_v39  ;;  %1803 = vlog2.f32 %v1053_v32 }
 0x1fb   : > { %v1374_v20 = vsub.f32 %v2583_v49, %v1268_v53  ;;  %1805 = vlog2.f32 %v1149_v8  ;;  %v3222_v53 = vld [vmem:[#allocation30_spill] sm:$0xff] }
 0x1fc   : > { %1454 = vst.msk [vmem:[%s2850_s25 + $0x128] sm:$0xff] %vm648_vm1, %v1390_v44  ;;  %v1406_v18 = vsub.f32 %v2591_v35, %v1332_v58 }
 0x1fd   : > { %1438 = vst.msk [vmem:[%s2850_s25 + $0xa8] sm:$0xff] %vm648_vm1, %v1374_v20  ;;  %v3224_v20 = vld [vmem:[#allocation31_spill] sm:$0xff] }
 0x1fe   : > { %1470 = vst.msk [vmem:[%s2850_s25 + $0x1a8] sm:$0xff] %vm648_vm1, %v1406_v18 }
 0x1ff   : > { %v1802_v41 = vpop.eup %1801  ;;  %v1197_v63 = vpop.xlane.xlu1 %1196 }
 0x200   : > { %v1804_v23 = vpop.eup %1803  ;;  %v1270_v19 = vmul.f32 0.6931472, %v1802_v41  ;;  %v1056_v62 = vpop.xlane.xlu2 %1055 }
 0x201   : > { %v1806_v60 = vpop.eup %1805  ;;  %v1238_v1 = vmul.f32 0.6931472, %v1804_v23  ;;  %1807 = vlog2.f32 %v1056_v62  ;;  %v1104_v49 = vpop.xlane.xlu0 %1103 }
 0x202   : > { %v1375_v7 = vsub.f32 %v2611_v22, %v1270_v19  ;;  %v1302_v10 = vmul.f32 0.6931472, %v1806_v60  ;;  %1809 = vlog2.f32 %v1197_v63 }
 0x203   : > { %v1359_v35 = vsub.f32 %v2607_v17, %v1238_v1  ;;  %1811 = vlog2.f32 %v1104_v49 }
 0x204   : > { %1439 = vst.msk [vmem:[%s2850_s25 + $0xb0] sm:$0xff] %vm648_vm1, %v1375_v7  ;;  %v1391_v50 = vsub.f32 %v2615_v46, %v1302_v10  ;;  %v3225_v7 = vld [vmem:[#allocation3_spill] sm:$0xff] }
 0x205   : > { %1423 = vst.msk [vmem:[%s2850_s25 + $0x30] sm:$0xff] %vm648_vm1, %v1359_v35 }
 0x206   : > { %1455 = vst.msk [vmem:[%s2850_s25 + $0x130] sm:$0xff] %vm648_vm1, %v1391_v50  ;;  %v3226_v50 = vld [vmem:[#allocation2_spill] sm:$0xff] }
 0x207   : > { %v1808_v25 = vpop.eup %1807  ;;  %v1152_v24 = vpop.xlane.xlu1 %1151 }
 0x208   : > { %v1810_v14 = vpop.eup %1809  ;;  %v1240_v26 = vmul.f32 0.6931472, %v1808_v25  ;;  %v1200_v22 = vpop.xlane.xlu2 %1199 }
 0x209   : > { %v1812_v38 = vpop.eup %1811  ;;  %v1334_v48 = vmul.f32 0.6931472, %v1810_v14  ;;  %1813 = vlog2.f32 %v1200_v22  ;;  %v1059_v17 = vpop.xlane.xlu0 %1058  ;;  %v3227_v14 = vld [vmem:[#allocation4_spill] sm:$0xff] }
 0x20a   : > { %v1360_v56 = vsub.f32 %v2635_v33, %v1240_v26  ;;  %v1272_v21 = vmul.f32 0.6931472, %v1812_v38  ;;  %1815 = vlog2.f32 %v1152_v24 }
 0x20b   : > { %v1407_v46 = vsub.f32 %v2631_v0, %v1334_v48  ;;  %1817 = vlog2.f32 %v1059_v17 }
 0x20c   : > { %1424 = vst.msk [vmem:[%s2850_s25 + $0x38] sm:$0xff] %vm648_vm1, %v1360_v56  ;;  %v1376_v52 = vsub.f32 %v2639_v15, %v1272_v21 }
 0x20d   : > { %1471 = vst.msk [vmem:[%s2850_s25 + $0x1b0] sm:$0xff] %vm648_vm1, %v1407_v46 }
 0x20e   : > { %1440 = vst.msk [vmem:[%s2850_s25 + $0xb8] sm:$0xff] %vm648_vm1, %v1376_v52  ;;  %v3228_v52 = vld [vmem:[#allocation6_spill] sm:$0xff] }
 0x20f   : > { %v1814_v29 = vpop.eup %1813  ;;  %v1107_v30 = vpop.xlane.xlu1 %1106 }
 0x210   : > { %v1816_v4 = vpop.eup %1815  ;;  %v1336_v9 = vmul.f32 0.6931472, %v1814_v29  ;;  %v1155_v33 = vpop.xlane.xlu2 %1154 }
 0x211   : > { %v1818_v36 = vpop.eup %1817  ;;  %v1304_v11 = vmul.f32 0.6931472, %v1816_v4  ;;  %1819 = vlog2.f32 %v1155_v33  ;;  %v1203_v0 = vpop.xlane.xlu0 %1202 }
 0x212   : > { %v1408_v61 = vsub.f32 %v2659_v12, %v1336_v9  ;;  %v1242_v57 = vmul.f32 0.6931472, %v1818_v36  ;;  %1821 = vlog2.f32 %v1107_v30  ;;  %v3229_v9 = vld [vmem:[#allocation5_spill] sm:$0xff]  ;;  %v3230_v30 = vld [vmem:[#allocation7_spill] sm:$0xff] }
 0x213   : > { %v1392_v15 = vsub.f32 %v2655_v34, %v1304_v11  ;;  %1823 = vlog2.f32 %v1203_v0 }
 0x214   : > { %1472 = vst.msk [vmem:[%s2850_s25 + $0x1b8] sm:$0xff] %vm648_vm1, %v1408_v61  ;;  %v1361_v5 = vsub.f32 %v2663_v55, %v1242_v57  ;;  %v3223_v55 = vld [vmem:[#allocation29_spill] sm:$0xff] }
 0x215   : > { %1456 = vst.msk [vmem:[%s2850_s25 + $0x138] sm:$0xff] %vm648_vm1, %v1392_v15 }
 0x216   : > { %1425 = vst.msk [vmem:[%s2850_s25 + $0x40] sm:$0xff] %vm648_vm1, %v1361_v5 }
 0x217   : > { %v1820_v59 = vpop.eup %1819  ;;  %v1062_v43 = vpop.xlane.xlu1 %1061 }
 0x218   : > { %v1822_v16 = vpop.eup %1821  ;;  %v1306_v40 = vmul.f32 0.6931472, %v1820_v59  ;;  %v1110_v12 = vpop.xlane.xlu2 %1109 }
 0x219   : > { %v1824_v32 = vpop.eup %1823  ;;  %v1274_v39 = vmul.f32 0.6931472, %v1822_v16  ;;  %1825 = vlog2.f32 %v1110_v12  ;;  %v1158_v34 = vpop.xlane.xlu0 %1157 }
 0x21a   : > { %v1393_v8 = vsub.f32 %v3222_v53, %v1306_v40  ;;  %v1338_v44 = vmul.f32 0.6931472, %v1824_v32  ;;  %1827 = vlog2.f32 %v1062_v43  ;;  %v3231_v40 = vld [vmem:[#allocation10_spill] sm:$0xff]  ;;  %v3232_v32 = vld [vmem:[#allocation8_spill] sm:$0xff] }
 0x21b   : > { %v1377_v58 = vsub.f32 %v3223_v55, %v1274_v39  ;;  %1829 = vlog2.f32 %v1158_v34  ;;  %v3233_v34 = vld [vmem:[#allocation9_spill] sm:$0xff] }
 0x21c   : > { %1457 = vst.msk [vmem:[%s2850_s25 + $0x140] sm:$0xff] %vm648_vm1, %v1393_v8  ;;  %v1409_v18 = vsub.f32 %v3224_v20, %v1338_v44 }
 0x21d   : > { %1441 = vst.msk [vmem:[%s2850_s25 + $0xc0] sm:$0xff] %vm648_vm1, %v1377_v58 }
 0x21e   : > { %1473 = vst.msk [vmem:[%s2850_s25 + $0x1c0] sm:$0xff] %vm648_vm1, %v1409_v18 }
 0x21f   : > { %v1826_v41 = vpop.eup %1825  ;;  %v1206_v63 = vpop.xlane.xlu1 %1205 }
 0x220   : > { %v1828_v23 = vpop.eup %1827  ;;  %v1276_v19 = vmul.f32 0.6931472, %v1826_v41  ;;  %v1065_v62 = vpop.xlane.xlu2 %1064 }
 0x221   : > { %v1830_v60 = vpop.eup %1829  ;;  %v1244_v1 = vmul.f32 0.6931472, %v1828_v23  ;;  %1831 = vlog2.f32 %v1065_v62  ;;  %v1113_v49 = vpop.xlane.xlu0 %1112 }
 0x222   : > { %v1378_v10 = vsub.f32 %v3225_v7, %v1276_v19  ;;  %v1308_v35 = vmul.f32 0.6931472, %v1830_v60  ;;  %1833 = vlog2.f32 %v1206_v63  ;;  %v3234_v63 = vld [vmem:[#allocation11_spill] sm:$0xff] }
 0x223   : > { %v1362_v25 = vsub.f32 %v3226_v50, %v1244_v1  ;;  %1835 = vlog2.f32 %v1113_v49  ;;  %v3235_v1 = vld [vmem:[#allocation12_spill] sm:$0xff] }
 0x224   : > { %1442 = vst.msk [vmem:[%s2850_s25 + $0xc8] sm:$0xff] %vm648_vm1, %v1378_v10  ;;  %v1394_v26 = vsub.f32 %v3227_v14, %v1308_v35 }
 0x225   : > { %1426 = vst.msk [vmem:[%s2850_s25 + $0x48] sm:$0xff] %vm648_vm1, %v1362_v25 }
 0x226   : > { %1458 = vst.msk [vmem:[%s2850_s25 + $0x148] sm:$0xff] %vm648_vm1, %v1394_v26 }
 0x227   : > { %v1832_v22 = vpop.eup %1831  ;;  %v1161_v17 = vpop.xlane.xlu1 %1160 }
 0x228   : > { %v1834_v24 = vpop.eup %1833  ;;  %v1246_v38 = vmul.f32 0.6931472, %v1832_v22  ;;  %v1209_v48 = vpop.xlane.xlu2 %1208 }
 0x229   : > { %v1836_v56 = vpop.eup %1835  ;;  %v1340_v21 = vmul.f32 0.6931472, %v1834_v24  ;;  %1837 = vlog2.f32 %v1209_v48  ;;  %v1068_v46 = vpop.xlane.xlu0 %1067 }
 0x22a   : > { %v1363_v29 = vsub.f32 %v3228_v52, %v1246_v38  ;;  %v1278_v4 = vmul.f32 0.6931472, %v1836_v56  ;;  %1839 = vlog2.f32 %v1161_v17  ;;  %v3236_v38 = vld [vmem:[#allocation13_spill] sm:$0xff] }
 0x22b   : > { %v1410_v33 = vsub.f32 %v3229_v9, %v1340_v21  ;;  %1841 = vlog2.f32 %v1068_v46 }
 0x22c   : > { %1427 = vst.msk [vmem:[%s2850_s25 + $0x50] sm:$0xff] %vm648_vm1, %v1363_v29  ;;  %v1379_v36 = vsub.f32 %v3230_v30, %v1278_v4 }
 0x22d   : > { %1474 = vst.msk [vmem:[%s2850_s25 + $0x1c8] sm:$0xff] %vm648_vm1, %v1410_v33  ;;  %v3237_v33 = vld [vmem:[#allocation15_spill] sm:$0xff] }
 0x22e   : > { %1443 = vst.msk [vmem:[%s2850_s25 + $0xd0] sm:$0xff] %vm648_vm1, %v1379_v36 }
 0x22f   : > { %v1838_v11 = vpop.eup %1837  ;;  %v1116_v15 = vpop.xlane.xlu1 %1115 }
 0x230   : > { %v1840_v0 = vpop.eup %1839  ;;  %v1342_v61 = vmul.f32 0.6931472, %v1838_v11  ;;  %v1164_v57 = vpop.xlane.xlu2 %1163 }
 0x231   : > { %v1842_v5 = vpop.eup %1841  ;;  %v1310_v59 = vmul.f32 0.6931472, %v1840_v0  ;;  %1843 = vlog2.f32 %v1164_v57  ;;  %v1212_v16 = vpop.xlane.xlu0 %1211 }
 0x232   : > { %v1411_v12 = vsub.f32 %v3231_v40, %v1342_v61  ;;  %v1248_v43 = vmul.f32 0.6931472, %v1842_v5  ;;  %1845 = vlog2.f32 %v1116_v15 }
 0x233   : > { %v1395_v39 = vsub.f32 %v3232_v32, %v1310_v59  ;;  %1847 = vlog2.f32 %v1212_v16 }
 0x234   : > { %1475 = vst.msk [vmem:[%s2850_s25 + $0x1d0] sm:$0xff] %vm648_vm1, %v1411_v12  ;;  %v1364_v53 = vsub.f32 %v3233_v34, %v1248_v43 }
 0x235   : > { %1459 = vst.msk [vmem:[%s2850_s25 + $0x150] sm:$0xff] %vm648_vm1, %v1395_v39 }
 0x236   : > { %1428 = vst.msk [vmem:[%s2850_s25 + $0x58] sm:$0xff] %vm648_vm1, %v1364_v53 }
 0x237   : > { %v1844_v8 = vpop.eup %1843  ;;  %v1071_v20 = vpop.xlane.xlu1 %1070 }
 0x238   : > { %v1846_v44 = vpop.eup %1845  ;;  %v1312_v55 = vmul.f32 0.6931472, %v1844_v8  ;;  %v1119_v58 = vpop.xlane.xlu2 %1118 }
 0x239   : > { %v1848_v18 = vpop.eup %1847  ;;  %v1280_v41 = vmul.f32 0.6931472, %v1846_v44  ;;  %1849 = vlog2.f32 %v1119_v58  ;;  %v1167_v23 = vpop.xlane.xlu0 %1166 }
 0x23a   : > { %v1396_v19 = vsub.f32 %v2779_v45, %v1312_v55  ;;  %v1344_v62 = vmul.f32 0.6931472, %v1848_v18  ;;  %1851 = vlog2.f32 %v1071_v20 }
 0x23b   : > { %v1380_v60 = vsub.f32 %v3234_v63, %v1280_v41  ;;  %1853 = vlog2.f32 %v1167_v23 }
 0x23c   : > { %1460 = vst.msk [vmem:[%s2850_s25 + $0x158] sm:$0xff] %vm648_vm1, %v1396_v19  ;;  %v1412_v49 = vsub.f32 %v3235_v1, %v1344_v62 }
 0x23d   : > { %1444 = vst.msk [vmem:[%s2850_s25 + $0xd8] sm:$0xff] %vm648_vm1, %v1380_v60 }
 0x23e   : > { %1476 = vst.msk [vmem:[%s2850_s25 + $0x1d8] sm:$0xff] %vm648_vm1, %v1412_v49 }
 0x23f   : > { %v1850_v7 = vpop.eup %1849  ;;  %v1215_v50 = vpop.xlane.xlu1 %1214 }
 0x240   : > { %v1852_v10 = vpop.eup %1851  ;;  %v1282_v35 = vmul.f32 0.6931472, %v1850_v7  ;;  %v1074_v45 = vpop.xlane.xlu2 %1073 }
 0x241   : > { %v1854_v25 = vpop.eup %1853  ;;  %v1250_v14 = vmul.f32 0.6931472, %v1852_v10  ;;  %1855 = vlog2.f32 %v1074_v45  ;;  %v1122_v26 = vpop.xlane.xlu0 %1121 }
 0x242   : > { %v1381_v22 = vsub.f32 %v2797_v13, %v1282_v35  ;;  %v1314_v24 = vmul.f32 0.6931472, %v1854_v25  ;;  %1857 = vlog2.f32 %v1215_v50 }
 0x243   : > { %v1365_v48 = vsub.f32 %v3236_v38, %v1250_v14  ;;  %1859 = vlog2.f32 %v1122_v26 }
 0x244   : > { %1445 = vst.msk [vmem:[%s2850_s25 + $0xe0] sm:$0xff] %vm648_vm1, %v1381_v22  ;;  %v1397_v17 = vsub.f32 %v2809_v3, %v1314_v24  ;;  %v3238_v3 = vld [vmem:[#allocation14_spill] sm:$0xff] }
 0x245   : > { %1429 = vst.msk [vmem:[%s2850_s25 + $0x60] sm:$0xff] %vm648_vm1, %v1365_v48 }
 0x246   : > { %1461 = vst.msk [vmem:[%s2850_s25 + $0x160] sm:$0xff] %vm648_vm1, %v1397_v17 }
 0x247   : > { %v1856_v56 = vpop.eup %1855  ;;  %v1170_v52 = vpop.xlane.xlu1 %1169 }
 0x248   : > { %v1858_v21 = vpop.eup %1857  ;;  %v1252_v46 = vmul.f32 0.6931472, %v1856_v56  ;;  %v1173_v13 = vpop.xlane.xlu2 %1172 }
 0x249   : > { %v1860_v29 = vpop.eup %1859  ;;  %v1346_v4 = vmul.f32 0.6931472, %v1858_v21  ;;  %1861 = vlog2.f32 %v1173_v13  ;;  %v1077_v9 = vpop.xlane.xlu0 %1076 }
 0x24a   : > { %v1366_v30 = vsub.f32 %v3237_v33, %v1252_v46  ;;  %v1284_v36 = vmul.f32 0.6931472, %v1860_v29  ;;  %1863 = vlog2.f32 %v1170_v52 }
 0x24b   : > { %v1413_v11 = vsub.f32 %v3238_v3, %v1346_v4  ;;  %1865 = vlog2.f32 %v1077_v9 }
 0x24c   : > { %1430 = vst.msk [vmem:[%s2850_s25 + $0x68] sm:$0xff] %vm648_vm1, %v1366_v30  ;;  %v1382_v0 = vsub.f32 %v2827_v6, %v1284_v36  ;;  %v3239_v6 = vld [vmem:[#allocation16_spill] sm:$0xff] }
 0x24d   : > { %1477 = vst.msk [vmem:[%s2850_s25 + $0x1e0] sm:$0xff] %vm648_vm1, %v1413_v11 }
 0x24e   : > { %1446 = vst.msk [vmem:[%s2850_s25 + $0xe8] sm:$0xff] %vm648_vm1, %v1382_v0 }
 0x24f   : > { %v1862_v61 = vpop.eup %1861  ;;  %v1125_v59 = vpop.xlane.xlu1 %1124 }
 0x250   : > { %v1864_v57 = vpop.eup %1863  ;;  %v1318_v15 = vmul.f32 0.6931472, %v1862_v61  ;;  %v1128_v5 = vpop.xlane.xlu2 %1127 }
 0x251   : > { %v1866_v16 = vpop.eup %1865  ;;  %v1316_v40 = vmul.f32 0.6931472, %v1864_v57  ;;  %1867 = vlog2.f32 %v1128_v5  ;;  %v1176_v12 = vpop.xlane.xlu0 %1175 }
 0x252   : > { %v1399_v43 = vsub.f32 %v2843_v54, %v1318_v15  ;;  %v1254_v32 = vmul.f32 0.6931472, %v1866_v16  ;;  %1869 = vlog2.f32 %v1125_v59 }
 0x253   : > { %v1398_v39 = vsub.f32 %v3239_v6, %v1316_v40  ;;  %1871 = vlog2.f32 %v1176_v12 }
 0x254   : > { %1463 = vst.msk [vmem:[%s2850_s25 + $0x170] sm:$0xff] %vm648_vm1, %v1399_v43  ;;  %v1367_v34 = vsub.f32 %v2838_v27, %v1254_v32 }
 0x255   : > { %1462 = vst.msk [vmem:[%s2850_s25 + $0x168] sm:$0xff] %vm648_vm1, %v1398_v39 }
 0x256   : > { %1431 = vst.msk [vmem:[%s2850_s25 + $0x70] sm:$0xff] %vm648_vm1, %v1367_v34 }
 0x257   : > { %v1868_v53 = vpop.eup %1867  ;;  %v1080_v55 = vpop.xlane.xlu1 %1079 }
 0x258   : > { %v1870_v8 = vpop.eup %1869  ;;  %v1288_v44 = vmul.f32 0.6931472, %v1868_v53  ;;  %v1218_v54 = vpop.xlane.xlu2 %1217 }
 0x259   : > { %v1872_v58 = vpop.eup %1871  ;;  %v1286_v20 = vmul.f32 0.6931472, %v1870_v8  ;;  %1873 = vlog2.f32 %v1218_v54  ;;  %v1221_v18 = vpop.xlane.xlu0 %1220 }
 0x25a   : > { %v1384_v41 = vsub.f32 %v2873_v47, %v1288_v44  ;;  %v1320_v23 = vmul.f32 0.6931472, %v1872_v58  ;;  %1875 = vlog2.f32 %v1080_v55 }
 0x25b   : > { %v1383_v27 = vsub.f32 %v2869_v2, %v1286_v20  ;;  %1877 = vlog2.f32 %v1221_v18 }
 0x25c   : > { %1448 = vst.msk [vmem:[%s2850_s25 + $0xf8] sm:$0xff] %vm648_vm1, %v1384_v41  ;;  %v1400_v19 = vsub.f32 %v2881_v51, %v1320_v23 }
 0x25d   : > { %1447 = vst.msk [vmem:[%s2850_s25 + $0xf0] sm:$0xff] %vm648_vm1, %v1383_v27 }
 0x25e   : > { %1464 = vst.msk [vmem:[%s2850_s25 + $0x178] sm:$0xff] %vm648_vm1, %v1400_v19 }
 0x25f   : > { %v1874_v62 = vpop.eup %1873  ;;  %v1224_v60 = vpop.xlane.xlu1 %1223 }
 0x260   : > { %v1876_v63 = vpop.eup %1875  ;;  %v1348_v47 = vmul.f32 0.6931472, %v1874_v62  ;;  %1879 = vlog2.f32 %v1224_v60 }
 0x261   : > { %v1878_v1 = vpop.eup %1877  ;;  %v1256_v49 = vmul.f32 0.6931472, %v1876_v63 }
 0x262   : > { %v1414_v2 = vsub.f32 %v2893_v28, %v1348_v47  ;;  %v1350_v7 = vmul.f32 0.6931472, %v1878_v1 }
 0x263   : > { %v1368_v10 = vsub.f32 %v2903_v37, %v1256_v49 }
 0x264   : > { %1478 = vst.msk [vmem:[%s2850_s25 + $0x1e8] sm:$0xff] %vm648_vm1, %v1414_v2  ;;  %v1415_v51 = vsub.f32 %v2899_v31, %v1350_v7 }
 0x265   : > { %1432 = vst.msk [vmem:[%s2850_s25 + $0x78] sm:$0xff] %vm648_vm1, %v1368_v10 }
 0x266   : > { %1479 = vst.msk [vmem:[%s2850_s25 + $0x1f0] sm:$0xff] %vm648_vm1, %v1415_v51  ;;  %v1880_v35 = vpop.eup %1879 }
 0x267   : > { %v1352_v45 = vmul.f32 0.6931472, %v1880_v35 }
 0x269   : > { %v1416_v50 = vsub.f32 %v2923_v42, %v1352_v45 }
 0x26b   : > { %1480 = vst.msk [vmem:[%s2850_s25 + $0x1f8] sm:$0xff] %vm648_vm1, %v1416_v50 }
 0x26c PF: > { %s13_s12 = sadd.s32 1, %s1887_s12  }
 0x26d   : > { %p10_p4 = scmp.ge.s32.totalorder %s13_s12, 4  }
 0x26f   :  { %12 = sbr.rel (!%p10_p4) target bundleno = 1 (0x1), region = 62 }

</bundles_post_ra>
